<compile_context>
chip_gen: v5e
topology: v5e:2x2
jax: 0.10.0
libtpu: 0.0.40
codegen_flags: <defaults>
</compile_context>

<pallas_src>
import math

import jax
import jax.numpy as jnp
from jax import lax
from jax.experimental import pallas as pl
from jax.experimental.pallas import tpu as pltpu

# Model hyper-parameters (match the PyTorch module defaults).
STACK = 16                 # stack_size (sequence length)
STATE = 8                  # state_size = in_features // stack_size
IN_FEATURES = STACK * STATE   # 128
HID = 32                   # hidden_size (d_model), nhead = 1, num_layers = 1
OUT = 4                    # out_features
DFF = 2048                 # nn.TransformerEncoderLayer default dim_feedforward
LN_EPS = 1e-5              # nn.LayerNorm default eps
MIN_STD = 1e-4
NEG_SLOPE = 0.01           # F.leaky_relu default negative_slope

# Column layout of the fused block-diagonal projection weight W_big (128, 1088):
K_OFF = 0                       # K for tokens 0..15, HID cols each
V_OFF = STACK * HID             # 512: V for tokens 0..15
EMB_OFF = 2 * STACK * HID       # 1024: last-token embedding
Q_OFF = EMB_OFF + HID           # 1056: last-token query (pre-scaled by 1/sqrt(HID))
BIG_WIDTH = Q_OFF + HID         # 1088


def _layer_norm(x, gamma, beta):
    mu = jnp.mean(x, axis=-1, keepdims=True)
    var = jnp.mean((x - mu) ** 2, axis=-1, keepdims=True)
    return (x - mu) * lax.rsqrt(var + LN_EPS) * gamma + beta


def policy_kernel(x_ref, wbig_ref, bbig_ref, wo_ref, w1_ref, b1_ref, w2_ref,
                  wh_ref, bh_ref, vec_ref, out_ref):
    f32, bf16 = jnp.float32, jnp.bfloat16
    TB = x_ref.shape[0]

    # packed (1, HID) vectors
    bo  = vec_ref[0:1, :]
    g1  = vec_ref[1:2, :]
    bn1 = vec_ref[2:3, :]
    b2  = vec_ref[3:4, :]
    g2  = vec_ref[4:5, :]
    bn2 = vec_ref[5:6, :]

    x = x_ref[...].astype(bf16)                       # (TB, 128) sample-major token states

    # --- single fused MXU op: K/V for all tokens + last-token emb + query ----
    proj = jnp.dot(x, wbig_ref[...], preferred_element_type=f32) + bbig_ref[...]  # (TB, 1088)

    emb_last = proj[:, EMB_OFF:EMB_OFF + HID]         # (TB, H)
    q_last   = proj[:, Q_OFF:Q_OFF + HID]             # (TB, H), already * 1/sqrt(H)

    # --- per-sample attention over the 16 tokens of each sample --------------
    cols = []
    for s in range(STACK):
        k_s = proj[:, K_OFF + s * HID: K_OFF + (s + 1) * HID]
        cols.append(jnp.sum(q_last * k_s, axis=-1, keepdims=True))
    scores = jnp.concatenate(cols, axis=-1)           # (TB, STACK)
    scores = scores - jnp.max(scores, axis=-1, keepdims=True)
    p = jnp.exp(scores)
    p = p / jnp.sum(p, axis=-1, keepdims=True)        # (TB, STACK)

    attn = jnp.zeros((TB, HID), f32)
    for s in range(STACK):
        v_s = proj[:, V_OFF + s * HID: V_OFF + (s + 1) * HID]
        attn = attn + p[:, s:s + 1] * v_s
    attn = jnp.dot(attn.astype(bf16), wo_ref[...], preferred_element_type=f32) + bo  # (TB, H)

    # --- rest of the post-norm encoder layer, last token only ----------------
    h1 = _layer_norm(emb_last + attn, g1, bn1)
    ff = jnp.maximum(
        jnp.dot(h1.astype(bf16), w1_ref[...], preferred_element_type=f32) + b1_ref[...],
        0.0).astype(bf16)                                                 # (TB, DFF) bf16
    ff = jnp.dot(ff, w2_ref[...], preferred_element_type=f32) + b2        # (TB, H)
    h2 = _layer_norm(h1 + ff, g2, bn2)
    h2 = jnp.where(h2 >= 0, h2, NEG_SLOPE * h2)                           # leaky_relu

    # --- fused mean/std heads, emitted transposed (batch axis on lanes) ------
    out_t = lax.dot_general(wh_ref[...], h2.astype(bf16),
                            (((1,), (1,)), ((), ())),
                            preferred_element_type=f32) + bh_ref[...]     # (2*OUT, TB)
    row = lax.broadcasted_iota(jnp.int32, (2 * OUT, TB), 0)
    sp = jnp.maximum(out_t, 0.0) + jnp.log1p(jnp.exp(-jnp.abs(out_t)))    # stable softplus
    out_ref[...] = jnp.where(row < OUT, jnp.tanh(out_t), jnp.maximum(sp, MIN_STD))


# ----------------------------------------------------------------------------
# Parameter handling
# ----------------------------------------------------------------------------
def init_torch_like_params(key):
    """Deterministic parameters in PyTorch nn.Linear layout ((out,in) W, (out,) b)."""
    ks = iter(jax.random.split(key, 16))

    def lin(k, out_d, in_d, scale):
        kw, kb = jax.random.split(k)
        return (scale * jax.random.normal(kw, (out_d, in_d), jnp.float32),
                0.01 * jax.random.normal(kb, (out_d,), jnp.float32))

    p = {}
    p["embedding.w"], p["embedding.b"] = lin(next(ks), HID, STATE, 0.2)
    p["attn.in_proj_w"], p["attn.in_proj_b"] = lin(next(ks), 3 * HID, HID, 0.1)
    p["attn.out_proj_w"], p["attn.out_proj_b"] = lin(next(ks), HID, HID, 0.1)
    p["ln1.g"], p["ln1.b"] = jnp.ones((HID,), jnp.float32), jnp.zeros((HID,), jnp.float32)
    p["ffn.w1"], p["ffn.b1"] = lin(next(ks), DFF, HID, 0.05)
    p["ffn.w2"], p["ffn.b2"] = lin(next(ks), HID, DFF, 0.05)
    p["ln2.g"], p["ln2.b"] = jnp.ones((HID,), jnp.float32), jnp.zeros((HID,), jnp.float32)
    p["mean.w"], p["mean.b"] = lin(next(ks), OUT, HID, 0.1)
    p["std.w"], p["std.b"] = lin(next(ks), OUT, HID, 0.1)
    return p


def pack_params(p):
    """Convert torch-layout params into the fused/packed kernel operand list."""
    bf16, f32 = jnp.bfloat16, jnp.float32
    scale = 1.0 / math.sqrt(HID)

    we_t = p["embedding.w"].T.astype(f32)                    # (STATE, HID)
    be = p["embedding.b"].astype(f32)                        # (HID,)
    ipw = p["attn.in_proj_w"].astype(f32)                    # (3H, H) rows: q,k,v
    ipb = p["attn.in_proj_b"].astype(f32)
    wq_t, wk_t, wv_t = ipw[:HID].T, ipw[HID:2 * HID].T, ipw[2 * HID:].T
    bq, bk, bv = ipb[:HID], ipb[HID:2 * HID], ipb[2 * HID:]

    # Fold the embedding into the Q/K/V projections (compose in f32, cast once).
    wek, bek = we_t @ wk_t, be @ wk_t + bk
    wev, bev = we_t @ wv_t, be @ wv_t + bv
    weq, beq = (we_t @ wq_t) * scale, (be @ wq_t + bq) * scale   # 1/sqrt(H) folded into Q

    # Block-diagonal fused projection: token s's 8 state features map to its own
    # K/V columns; the last token additionally produces emb_last and q_last.
    wbig = jnp.zeros((IN_FEATURES, BIG_WIDTH), f32)
    for s in range(STACK):
        r = slice(s * STATE, (s + 1) * STATE)
        wbig = wbig.at[r, K_OFF + s * HID: K_OFF + (s + 1) * HID].set(wek)
        wbig = wbig.at[r, V_OFF + s * HID: V_OFF + (s + 1) * HID].set(wev)
    last = slice((STACK - 1) * STATE, STACK * STATE)
    wbig = wbig.at[last, EMB_OFF:EMB_OFF + HID].set(we_t)
    wbig = wbig.at[last, Q_OFF:Q_OFF + HID].set(weq)

    bbig = jnp.concatenate(
        [jnp.tile(bek, STACK), jnp.tile(bev, STACK), be, beq])[None, :]   # (1, 1088)

    vecs = jnp.zeros((8, HID), f32)
    vecs = vecs.at[0].set(p["attn.out_proj_b"])
    vecs = vecs.at[1].set(p["ln1.g"])
    vecs = vecs.at[2].set(p["ln1.b"])
    vecs = vecs.at[3].set(p["ffn.b2"])
    vecs = vecs.at[4].set(p["ln2.g"])
    vecs = vecs.at[5].set(p["ln2.b"])

    return [
        wbig.astype(bf16),                                         # (128, 1088) bf16
        bbig.astype(f32),                                          # (1, 1088)   f32
        p["attn.out_proj_w"].T.astype(bf16),                       # Wo (H, H)   bf16
        p["ffn.w1"].T.astype(bf16),                                # W1 (H, DFF) bf16
        p["ffn.b1"][None, :].astype(f32),                          # b1 (1, DFF) f32
        p["ffn.w2"].T.astype(bf16),                                # W2 (DFF, H) bf16
        jnp.concatenate([p["mean.w"], p["std.w"]], 0).astype(bf16),            # (2*OUT, H)
        jnp.concatenate([p["mean.b"], p["std.b"]], 0)[:, None].astype(f32),    # (2*OUT, 1)
        vecs,                                                      # (8, H)      f32
    ]


# ----------------------------------------------------------------------------
# Wrapper
# ----------------------------------------------------------------------------
def _choose_tb(B):
    if B <= 128:
        return ((B + 7) // 8) * 8       # single small block, minimal padding
    if B <= 1024:
        return 128                      # >= 2 grid steps -> both v7x TensorCores
    return 256                          # big batches: amortize per-step overhead


def policy_forward(state, packed_params):
    """state: (num_envs, num_samples, in_features) or (num_envs, in_features)."""
    if state.ndim == 2:
        state = state[:, None, :]
    num_envs, num_samples, in_features = state.shape
    assert in_features == IN_FEATURES
    B = num_envs * num_samples

    x = state.reshape(B, IN_FEATURES).astype(jnp.float32)   # lane-dense (B, 128)

    tb = _choose_tb(B)
    nb = pl.cdiv(B, tb)
    padded_B = nb * tb
    if padded_B != B:
        x = jnp.pad(x, ((0, padded_B - B), (0, 0)))

    w_specs = [pl.BlockSpec(tuple(w.shape), lambda b: (0, 0)) for w in packed_params]

    out_t = pl.pallas_call(
        policy_kernel,
        out_shape=jax.ShapeDtypeStruct((2 * OUT, padded_B), jnp.float32),
        grid=(nb,),
        in_specs=[pl.BlockSpec((tb, IN_FEATURES), lambda b: (b, 0))] + w_specs,
        out_specs=pl.BlockSpec((2 * OUT, tb), lambda b: (0, b)),
        compiler_params=pltpu.CompilerParams(
            dimension_semantics=("parallel",),
            vmem_limit_bytes=32 * 1024 * 1024),
    )(x, *packed_params)

    out = out_t[:, :B].T                                    # (B, 2*OUT), drop padding
    means = out[:, :OUT].reshape(num_envs, num_samples, OUT)
    stds = out[:, OUT:].reshape(num_envs, num_samples, OUT)
    return means, stds


if __name__ == "__main__":
    key = jax.random.PRNGKey(0)
    k_params, k_state = jax.random.split(key)
    packed = pack_params(init_torch_like_params(k_params))

    num_envs, num_samples = 2, 4
    state = jax.random.normal(k_state, (num_envs, num_samples, IN_FEATURES),
                              dtype=jnp.float32)

    means, stds = policy_forward(state, packed)
    jax.block_until_ready((means, stds))

    assert means.shape == (num_envs, num_samples, OUT)
    assert stds.shape == (num_envs, num_samples, OUT)
    assert bool(jnp.all(jnp.isfinite(means))) and bool(jnp.all(jnp.isfinite(stds)))
    assert bool(jnp.all(jnp.abs(means) <= 1.0))     # tanh head
    assert bool(jnp.all(stds >= MIN_STD))           # clamped softplus head
    print("KERNEL_OK")
</pallas_src>

<mosaic_0001>
module attributes {stable_mosaic.version = 11 : i64} {
  func.func @policy_kernel(%arg0: i32, %arg1: memref<8x128xf32, #tpu.memory_space<vmem>>, %arg2: memref<128x1088xbf16, #tpu.memory_space<vmem>>, %arg3: memref<1x1088xf32, #tpu.memory_space<vmem>>, %arg4: memref<32x32xbf16, #tpu.memory_space<vmem>>, %arg5: memref<32x2048xbf16, #tpu.memory_space<vmem>>, %arg6: memref<1x2048xf32, #tpu.memory_space<vmem>>, %arg7: memref<2048x32xbf16, #tpu.memory_space<vmem>>, %arg8: memref<8x32xbf16, #tpu.memory_space<vmem>>, %arg9: memref<8x1xf32, #tpu.memory_space<vmem>>, %arg10: memref<8x32xf32, #tpu.memory_space<vmem>>, %arg11: memref<8x8xf32, #tpu.memory_space<vmem>>) attributes {dimension_semantics = [#tpu.dimension_semantics<parallel>], iteration_bounds = array<i64: 1>, scalar_prefetch = 0 : i64, scratch_operands = 0 : i64, tpu.core_type = #tpu.core_type<tc>, window_params = [{transform_indices = @transform_0, window_bounds = array<i64: 8, 128>}, {pipeline_mode = #tpu.pipeline_mode<synchronous>, transform_indices = @transform_1, window_bounds = array<i64: 128, 1088>}, {pipeline_mode = #tpu.pipeline_mode<synchronous>, transform_indices = @transform_2, window_bounds = array<i64: 1, 1088>}, {pipeline_mode = #tpu.pipeline_mode<synchronous>, transform_indices = @transform_3, window_bounds = array<i64: 32, 32>}, {pipeline_mode = #tpu.pipeline_mode<synchronous>, transform_indices = @transform_4, window_bounds = array<i64: 32, 2048>}, {pipeline_mode = #tpu.pipeline_mode<synchronous>, transform_indices = @transform_5, window_bounds = array<i64: 1, 2048>}, {pipeline_mode = #tpu.pipeline_mode<synchronous>, transform_indices = @transform_6, window_bounds = array<i64: 2048, 32>}, {pipeline_mode = #tpu.pipeline_mode<synchronous>, transform_indices = @transform_7, window_bounds = array<i64: 8, 32>}, {pipeline_mode = #tpu.pipeline_mode<synchronous>, transform_indices = @transform_8, window_bounds = array<i64: 8, 1>}, {pipeline_mode = #tpu.pipeline_mode<synchronous>, transform_indices = @transform_9, window_bounds = array<i64: 8, 32>}, {transform_indices = @transform_10, window_bounds = array<i64: 8, 8>}]} {
    %c0 = arith.constant 0 : index
    %c0_0 = arith.constant 0 : index
    %0 = vector.load %arg10[%c0, %c0_0] : memref<8x32xf32, #tpu.memory_space<vmem>>, vector<1x32xf32>
    %c1 = arith.constant 1 : index
    %c0_1 = arith.constant 0 : index
    %1 = vector.load %arg10[%c1, %c0_1] : memref<8x32xf32, #tpu.memory_space<vmem>>, vector<1x32xf32>
    %c2 = arith.constant 2 : index
    %c0_2 = arith.constant 0 : index
    %2 = vector.load %arg10[%c2, %c0_2] : memref<8x32xf32, #tpu.memory_space<vmem>>, vector<1x32xf32>
    %c3 = arith.constant 3 : index
    %c0_3 = arith.constant 0 : index
    %3 = vector.load %arg10[%c3, %c0_3] : memref<8x32xf32, #tpu.memory_space<vmem>>, vector<1x32xf32>
    %c4 = arith.constant 4 : index
    %c0_4 = arith.constant 0 : index
    %4 = vector.load %arg10[%c4, %c0_4] : memref<8x32xf32, #tpu.memory_space<vmem>>, vector<1x32xf32>
    %c5 = arith.constant 5 : index
    %c0_5 = arith.constant 0 : index
    %5 = vector.load %arg10[%c5, %c0_5] : memref<8x32xf32, #tpu.memory_space<vmem>>, vector<1x32xf32>
    %c0_6 = arith.constant 0 : index
    %c0_7 = arith.constant 0 : index
    %6 = vector.load %arg1[%c0_6, %c0_7] : memref<8x128xf32, #tpu.memory_space<vmem>>, vector<8x128xf32>
    %7 = arith.truncf %6 : vector<8x128xf32> to vector<8x128xbf16>
    %c0_8 = arith.constant 0 : index
    %c0_9 = arith.constant 0 : index
    %8 = vector.load %arg2[%c0_8, %c0_9] : memref<128x1088xbf16, #tpu.memory_space<vmem>>, vector<128x1088xbf16>
    %cst = arith.constant dense<0.000000e+00> : vector<8x1088xf32>
    %9 = tpu.matmul %7, %8, %cst {dimension_numbers = #tpu.dot_dimension_numbers<[1], [0], [0], [1], [0, 0, 1, 1], [], []>} : vector<8x128xbf16>, vector<128x1088xbf16>, vector<8x1088xf32> -> vector<8x1088xf32>
    %c0_10 = arith.constant 0 : index
    %c0_11 = arith.constant 0 : index
    %10 = vector.load %arg3[%c0_10, %c0_11] : memref<1x1088xf32, #tpu.memory_space<vmem>>, vector<1x1088xf32>
    %11 = vector.broadcast %10 : vector<1x1088xf32> to vector<8x1088xf32>
    %12 = arith.addf %9, %11 : vector<8x1088xf32>
    %13 = vector.extract_strided_slice %12 {offsets = [0, 1024], sizes = [8, 32], strides = [1, 1]} : vector<8x1088xf32> to vector<8x32xf32>
    %14 = vector.extract_strided_slice %12 {offsets = [0, 1056], sizes = [8, 32], strides = [1, 1]} : vector<8x1088xf32> to vector<8x32xf32>
    %15 = vector.extract_strided_slice %12 {offsets = [0, 0], sizes = [8, 32], strides = [1, 1]} : vector<8x1088xf32> to vector<8x32xf32>
    %16 = arith.mulf %14, %15 : vector<8x32xf32>
    %cst_12 = arith.constant dense<0.000000e+00> : vector<8xf32>
    %17 = vector.multi_reduction <add>, %16, %cst_12 [1] : vector<8x32xf32> to vector<8xf32>
    %18 = vector.shape_cast %17 : vector<8xf32> to vector<8x1xf32>
    %19 = vector.extract_strided_slice %12 {offsets = [0, 32], sizes = [8, 32], strides = [1, 1]} : vector<8x1088xf32> to vector<8x32xf32>
    %20 = arith.mulf %14, %19 : vector<8x32xf32>
    %cst_13 = arith.constant dense<0.000000e+00> : vector<8xf32>
    %21 = vector.multi_reduction <add>, %20, %cst_13 [1] : vector<8x32xf32> to vector<8xf32>
    %22 = vector.shape_cast %21 : vector<8xf32> to vector<8x1xf32>
    %23 = vector.extract_strided_slice %12 {offsets = [0, 64], sizes = [8, 32], strides = [1, 1]} : vector<8x1088xf32> to vector<8x32xf32>
    %24 = arith.mulf %14, %23 : vector<8x32xf32>
    %cst_14 = arith.constant dense<0.000000e+00> : vector<8xf32>
    %25 = vector.multi_reduction <add>, %24, %cst_14 [1] : vector<8x32xf32> to vector<8xf32>
    %26 = vector.shape_cast %25 : vector<8xf32> to vector<8x1xf32>
    %27 = vector.extract_strided_slice %12 {offsets = [0, 96], sizes = [8, 32], strides = [1, 1]} : vector<8x1088xf32> to vector<8x32xf32>
    %28 = arith.mulf %14, %27 : vector<8x32xf32>
    %cst_15 = arith.constant dense<0.000000e+00> : vector<8xf32>
    %29 = vector.multi_reduction <add>, %28, %cst_15 [1] : vector<8x32xf32> to vector<8xf32>
    %30 = vector.shape_cast %29 : vector<8xf32> to vector<8x1xf32>
    %31 = vector.extract_strided_slice %12 {offsets = [0, 128], sizes = [8, 32], strides = [1, 1]} : vector<8x1088xf32> to vector<8x32xf32>
    %32 = arith.mulf %14, %31 : vector<8x32xf32>
    %cst_16 = arith.constant dense<0.000000e+00> : vector<8xf32>
    %33 = vector.multi_reduction <add>, %32, %cst_16 [1] : vector<8x32xf32> to vector<8xf32>
    %34 = vector.shape_cast %33 : vector<8xf32> to vector<8x1xf32>
    %35 = vector.extract_strided_slice %12 {offsets = [0, 160], sizes = [8, 32], strides = [1, 1]} : vector<8x1088xf32> to vector<8x32xf32>
    %36 = arith.mulf %14, %35 : vector<8x32xf32>
    %cst_17 = arith.constant dense<0.000000e+00> : vector<8xf32>
    %37 = vector.multi_reduction <add>, %36, %cst_17 [1] : vector<8x32xf32> to vector<8xf32>
    %38 = vector.shape_cast %37 : vector<8xf32> to vector<8x1xf32>
    %39 = vector.extract_strided_slice %12 {offsets = [0, 192], sizes = [8, 32], strides = [1, 1]} : vector<8x1088xf32> to vector<8x32xf32>
    %40 = arith.mulf %14, %39 : vector<8x32xf32>
    %cst_18 = arith.constant dense<0.000000e+00> : vector<8xf32>
    %41 = vector.multi_reduction <add>, %40, %cst_18 [1] : vector<8x32xf32> to vector<8xf32>
    %42 = vector.shape_cast %41 : vector<8xf32> to vector<8x1xf32>
    %43 = vector.extract_strided_slice %12 {offsets = [0, 224], sizes = [8, 32], strides = [1, 1]} : vector<8x1088xf32> to vector<8x32xf32>
    %44 = arith.mulf %14, %43 : vector<8x32xf32>
    %cst_19 = arith.constant dense<0.000000e+00> : vector<8xf32>
    %45 = vector.multi_reduction <add>, %44, %cst_19 [1] : vector<8x32xf32> to vector<8xf32>
    %46 = vector.shape_cast %45 : vector<8xf32> to vector<8x1xf32>
    %47 = vector.extract_strided_slice %12 {offsets = [0, 256], sizes = [8, 32], strides = [1, 1]} : vector<8x1088xf32> to vector<8x32xf32>
    %48 = arith.mulf %14, %47 : vector<8x32xf32>
    %cst_20 = arith.constant dense<0.000000e+00> : vector<8xf32>
    %49 = vector.multi_reduction <add>, %48, %cst_20 [1] : vector<8x32xf32> to vector<8xf32>
    %50 = vector.shape_cast %49 : vector<8xf32> to vector<8x1xf32>
    %51 = vector.extract_strided_slice %12 {offsets = [0, 288], sizes = [8, 32], strides = [1, 1]} : vector<8x1088xf32> to vector<8x32xf32>
    %52 = arith.mulf %14, %51 : vector<8x32xf32>
    %cst_21 = arith.constant dense<0.000000e+00> : vector<8xf32>
    %53 = vector.multi_reduction <add>, %52, %cst_21 [1] : vector<8x32xf32> to vector<8xf32>
    %54 = vector.shape_cast %53 : vector<8xf32> to vector<8x1xf32>
    %55 = vector.extract_strided_slice %12 {offsets = [0, 320], sizes = [8, 32], strides = [1, 1]} : vector<8x1088xf32> to vector<8x32xf32>
    %56 = arith.mulf %14, %55 : vector<8x32xf32>
    %cst_22 = arith.constant dense<0.000000e+00> : vector<8xf32>
    %57 = vector.multi_reduction <add>, %56, %cst_22 [1] : vector<8x32xf32> to vector<8xf32>
    %58 = vector.shape_cast %57 : vector<8xf32> to vector<8x1xf32>
    %59 = vector.extract_strided_slice %12 {offsets = [0, 352], sizes = [8, 32], strides = [1, 1]} : vector<8x1088xf32> to vector<8x32xf32>
    %60 = arith.mulf %14, %59 : vector<8x32xf32>
    %cst_23 = arith.constant dense<0.000000e+00> : vector<8xf32>
    %61 = vector.multi_reduction <add>, %60, %cst_23 [1] : vector<8x32xf32> to vector<8xf32>
    %62 = vector.shape_cast %61 : vector<8xf32> to vector<8x1xf32>
    %63 = vector.extract_strided_slice %12 {offsets = [0, 384], sizes = [8, 32], strides = [1, 1]} : vector<8x1088xf32> to vector<8x32xf32>
    %64 = arith.mulf %14, %63 : vector<8x32xf32>
    %cst_24 = arith.constant dense<0.000000e+00> : vector<8xf32>
    %65 = vector.multi_reduction <add>, %64, %cst_24 [1] : vector<8x32xf32> to vector<8xf32>
    %66 = vector.shape_cast %65 : vector<8xf32> to vector<8x1xf32>
    %67 = vector.extract_strided_slice %12 {offsets = [0, 416], sizes = [8, 32], strides = [1, 1]} : vector<8x1088xf32> to vector<8x32xf32>
    %68 = arith.mulf %14, %67 : vector<8x32xf32>
    %cst_25 = arith.constant dense<0.000000e+00> : vector<8xf32>
    %69 = vector.multi_reduction <add>, %68, %cst_25 [1] : vector<8x32xf32> to vector<8xf32>
    %70 = vector.shape_cast %69 : vector<8xf32> to vector<8x1xf32>
    %71 = vector.extract_strided_slice %12 {offsets = [0, 448], sizes = [8, 32], strides = [1, 1]} : vector<8x1088xf32> to vector<8x32xf32>
    %72 = arith.mulf %14, %71 : vector<8x32xf32>
    %cst_26 = arith.constant dense<0.000000e+00> : vector<8xf32>
    %73 = vector.multi_reduction <add>, %72, %cst_26 [1] : vector<8x32xf32> to vector<8xf32>
    %74 = vector.shape_cast %73 : vector<8xf32> to vector<8x1xf32>
    %75 = vector.extract_strided_slice %12 {offsets = [0, 480], sizes = [8, 32], strides = [1, 1]} : vector<8x1088xf32> to vector<8x32xf32>
    %76 = arith.mulf %14, %75 : vector<8x32xf32>
    %cst_27 = arith.constant dense<0.000000e+00> : vector<8xf32>
    %77 = vector.multi_reduction <add>, %76, %cst_27 [1] : vector<8x32xf32> to vector<8xf32>
    %78 = vector.shape_cast %77 : vector<8xf32> to vector<8x1xf32>
    %79 = tpu.concatenate %18, %22, %26, %30, %34, %38, %42, %46, %50, %54, %58, %62, %66, %70, %74, %78 in 1 : vector<8x1xf32>, vector<8x1xf32>, vector<8x1xf32>, vector<8x1xf32>, vector<8x1xf32>, vector<8x1xf32>, vector<8x1xf32>, vector<8x1xf32>, vector<8x1xf32>, vector<8x1xf32>, vector<8x1xf32>, vector<8x1xf32>, vector<8x1xf32>, vector<8x1xf32>, vector<8x1xf32>, vector<8x1xf32> -> vector<8x16xf32>
    %cst_28 = arith.constant dense<0xFF800000> : vector<8xf32>
    %80 = vector.multi_reduction <maximumf>, %79, %cst_28 [1] : vector<8x16xf32> to vector<8xf32>
    %81 = vector.shape_cast %80 : vector<8xf32> to vector<8x1xf32>
    %82 = vector.broadcast %81 : vector<8x1xf32> to vector<8x16xf32>
    %83 = arith.subf %79, %82 : vector<8x16xf32>
    %84 = math.exp %83 : vector<8x16xf32>
    %cst_29 = arith.constant dense<0.000000e+00> : vector<8xf32>
    %85 = vector.multi_reduction <add>, %84, %cst_29 [1] : vector<8x16xf32> to vector<8xf32>
    %86 = vector.shape_cast %85 : vector<8xf32> to vector<8x1xf32>
    %87 = vector.broadcast %86 : vector<8x1xf32> to vector<8x16xf32>
    %88 = arith.divf %84, %87 : vector<8x16xf32>
    %cst_30 = arith.constant 0.000000e+00 : f32
    %89 = vector.broadcast %cst_30 : f32 to vector<8x32xf32>
    %90 = vector.extract_strided_slice %12 {offsets = [0, 512], sizes = [8, 32], strides = [1, 1]} : vector<8x1088xf32> to vector<8x32xf32>
    %91 = vector.extract_strided_slice %88 {offsets = [0, 0], sizes = [8, 1], strides = [1, 1]} : vector<8x16xf32> to vector<8x1xf32>
    %92 = vector.broadcast %91 : vector<8x1xf32> to vector<8x32xf32>
    %93 = arith.mulf %92, %90 : vector<8x32xf32>
    %94 = arith.addf %89, %93 : vector<8x32xf32>
    %95 = vector.extract_strided_slice %12 {offsets = [0, 544], sizes = [8, 32], strides = [1, 1]} : vector<8x1088xf32> to vector<8x32xf32>
    %96 = vector.extract_strided_slice %88 {offsets = [0, 1], sizes = [8, 1], strides = [1, 1]} : vector<8x16xf32> to vector<8x1xf32>
    %97 = vector.broadcast %96 : vector<8x1xf32> to vector<8x32xf32>
    %98 = arith.mulf %97, %95 : vector<8x32xf32>
    %99 = arith.addf %94, %98 : vector<8x32xf32>
    %100 = vector.extract_strided_slice %12 {offsets = [0, 576], sizes = [8, 32], strides = [1, 1]} : vector<8x1088xf32> to vector<8x32xf32>
    %101 = vector.extract_strided_slice %88 {offsets = [0, 2], sizes = [8, 1], strides = [1, 1]} : vector<8x16xf32> to vector<8x1xf32>
    %102 = vector.broadcast %101 : vector<8x1xf32> to vector<8x32xf32>
    %103 = arith.mulf %102, %100 : vector<8x32xf32>
    %104 = arith.addf %99, %103 : vector<8x32xf32>
    %105 = vector.extract_strided_slice %12 {offsets = [0, 608], sizes = [8, 32], strides = [1, 1]} : vector<8x1088xf32> to vector<8x32xf32>
    %106 = vector.extract_strided_slice %88 {offsets = [0, 3], sizes = [8, 1], strides = [1, 1]} : vector<8x16xf32> to vector<8x1xf32>
    %107 = vector.broadcast %106 : vector<8x1xf32> to vector<8x32xf32>
    %108 = arith.mulf %107, %105 : vector<8x32xf32>
    %109 = arith.addf %104, %108 : vector<8x32xf32>
    %110 = vector.extract_strided_slice %12 {offsets = [0, 640], sizes = [8, 32], strides = [1, 1]} : vector<8x1088xf32> to vector<8x32xf32>
    %111 = vector.extract_strided_slice %88 {offsets = [0, 4], sizes = [8, 1], strides = [1, 1]} : vector<8x16xf32> to vector<8x1xf32>
    %112 = vector.broadcast %111 : vector<8x1xf32> to vector<8x32xf32>
    %113 = arith.mulf %112, %110 : vector<8x32xf32>
    %114 = arith.addf %109, %113 : vector<8x32xf32>
    %115 = vector.extract_strided_slice %12 {offsets = [0, 672], sizes = [8, 32], strides = [1, 1]} : vector<8x1088xf32> to vector<8x32xf32>
    %116 = vector.extract_strided_slice %88 {offsets = [0, 5], sizes = [8, 1], strides = [1, 1]} : vector<8x16xf32> to vector<8x1xf32>
    %117 = vector.broadcast %116 : vector<8x1xf32> to vector<8x32xf32>
    %118 = arith.mulf %117, %115 : vector<8x32xf32>
    %119 = arith.addf %114, %118 : vector<8x32xf32>
    %120 = vector.extract_strided_slice %12 {offsets = [0, 704], sizes = [8, 32], strides = [1, 1]} : vector<8x1088xf32> to vector<8x32xf32>
    %121 = vector.extract_strided_slice %88 {offsets = [0, 6], sizes = [8, 1], strides = [1, 1]} : vector<8x16xf32> to vector<8x1xf32>
    %122 = vector.broadcast %121 : vector<8x1xf32> to vector<8x32xf32>
    %123 = arith.mulf %122, %120 : vector<8x32xf32>
    %124 = arith.addf %119, %123 : vector<8x32xf32>
    %125 = vector.extract_strided_slice %12 {offsets = [0, 736], sizes = [8, 32], strides = [1, 1]} : vector<8x1088xf32> to vector<8x32xf32>
    %126 = vector.extract_strided_slice %88 {offsets = [0, 7], sizes = [8, 1], strides = [1, 1]} : vector<8x16xf32> to vector<8x1xf32>
    %127 = vector.broadcast %126 : vector<8x1xf32> to vector<8x32xf32>
    %128 = arith.mulf %127, %125 : vector<8x32xf32>
    %129 = arith.addf %124, %128 : vector<8x32xf32>
    %130 = vector.extract_strided_slice %12 {offsets = [0, 768], sizes = [8, 32], strides = [1, 1]} : vector<8x1088xf32> to vector<8x32xf32>
    %131 = vector.extract_strided_slice %88 {offsets = [0, 8], sizes = [8, 1], strides = [1, 1]} : vector<8x16xf32> to vector<8x1xf32>
    %132 = vector.broadcast %131 : vector<8x1xf32> to vector<8x32xf32>
    %133 = arith.mulf %132, %130 : vector<8x32xf32>
    %134 = arith.addf %129, %133 : vector<8x32xf32>
    %135 = vector.extract_strided_slice %12 {offsets = [0, 800], sizes = [8, 32], strides = [1, 1]} : vector<8x1088xf32> to vector<8x32xf32>
    %136 = vector.extract_strided_slice %88 {offsets = [0, 9], sizes = [8, 1], strides = [1, 1]} : vector<8x16xf32> to vector<8x1xf32>
    %137 = vector.broadcast %136 : vector<8x1xf32> to vector<8x32xf32>
    %138 = arith.mulf %137, %135 : vector<8x32xf32>
    %139 = arith.addf %134, %138 : vector<8x32xf32>
    %140 = vector.extract_strided_slice %12 {offsets = [0, 832], sizes = [8, 32], strides = [1, 1]} : vector<8x1088xf32> to vector<8x32xf32>
    %141 = vector.extract_strided_slice %88 {offsets = [0, 10], sizes = [8, 1], strides = [1, 1]} : vector<8x16xf32> to vector<8x1xf32>
    %142 = vector.broadcast %141 : vector<8x1xf32> to vector<8x32xf32>
    %143 = arith.mulf %142, %140 : vector<8x32xf32>
    %144 = arith.addf %139, %143 : vector<8x32xf32>
    %145 = vector.extract_strided_slice %12 {offsets = [0, 864], sizes = [8, 32], strides = [1, 1]} : vector<8x1088xf32> to vector<8x32xf32>
    %146 = vector.extract_strided_slice %88 {offsets = [0, 11], sizes = [8, 1], strides = [1, 1]} : vector<8x16xf32> to vector<8x1xf32>
    %147 = vector.broadcast %146 : vector<8x1xf32> to vector<8x32xf32>
    %148 = arith.mulf %147, %145 : vector<8x32xf32>
    %149 = arith.addf %144, %148 : vector<8x32xf32>
    %150 = vector.extract_strided_slice %12 {offsets = [0, 896], sizes = [8, 32], strides = [1, 1]} : vector<8x1088xf32> to vector<8x32xf32>
    %151 = vector.extract_strided_slice %88 {offsets = [0, 12], sizes = [8, 1], strides = [1, 1]} : vector<8x16xf32> to vector<8x1xf32>
    %152 = vector.broadcast %151 : vector<8x1xf32> to vector<8x32xf32>
    %153 = arith.mulf %152, %150 : vector<8x32xf32>
    %154 = arith.addf %149, %153 : vector<8x32xf32>
    %155 = vector.extract_strided_slice %12 {offsets = [0, 928], sizes = [8, 32], strides = [1, 1]} : vector<8x1088xf32> to vector<8x32xf32>
    %156 = vector.extract_strided_slice %88 {offsets = [0, 13], sizes = [8, 1], strides = [1, 1]} : vector<8x16xf32> to vector<8x1xf32>
    %157 = vector.broadcast %156 : vector<8x1xf32> to vector<8x32xf32>
    %158 = arith.mulf %157, %155 : vector<8x32xf32>
    %159 = arith.addf %154, %158 : vector<8x32xf32>
    %160 = vector.extract_strided_slice %12 {offsets = [0, 960], sizes = [8, 32], strides = [1, 1]} : vector<8x1088xf32> to vector<8x32xf32>
    %161 = vector.extract_strided_slice %88 {offsets = [0, 14], sizes = [8, 1], strides = [1, 1]} : vector<8x16xf32> to vector<8x1xf32>
    %162 = vector.broadcast %161 : vector<8x1xf32> to vector<8x32xf32>
    %163 = arith.mulf %162, %160 : vector<8x32xf32>
    %164 = arith.addf %159, %163 : vector<8x32xf32>
    %165 = vector.extract_strided_slice %12 {offsets = [0, 992], sizes = [8, 32], strides = [1, 1]} : vector<8x1088xf32> to vector<8x32xf32>
    %166 = vector.extract_strided_slice %88 {offsets = [0, 15], sizes = [8, 1], strides = [1, 1]} : vector<8x16xf32> to vector<8x1xf32>
    %167 = vector.broadcast %166 : vector<8x1xf32> to vector<8x32xf32>
    %168 = arith.mulf %167, %165 : vector<8x32xf32>
    %169 = arith.addf %164, %168 : vector<8x32xf32>
    %170 = arith.truncf %169 : vector<8x32xf32> to vector<8x32xbf16>
    %c0_31 = arith.constant 0 : index
    %c0_32 = arith.constant 0 : index
    %171 = vector.load %arg4[%c0_31, %c0_32] : memref<32x32xbf16, #tpu.memory_space<vmem>>, vector<32x32xbf16>
    %cst_33 = arith.constant dense<0.000000e+00> : vector<8x32xf32>
    %172 = tpu.matmul %170, %171, %cst_33 {dimension_numbers = #tpu.dot_dimension_numbers<[1], [0], [0], [1], [0, 0, 1, 1], [], []>} : vector<8x32xbf16>, vector<32x32xbf16>, vector<8x32xf32> -> vector<8x32xf32>
    %173 = vector.broadcast %0 : vector<1x32xf32> to vector<8x32xf32>
    %174 = arith.addf %172, %173 : vector<8x32xf32>
    %175 = arith.addf %13, %174 : vector<8x32xf32>
    %cst_34 = arith.constant dense<0.000000e+00> : vector<8xf32>
    %176 = vector.multi_reduction <add>, %175, %cst_34 [1] : vector<8x32xf32> to vector<8xf32>
    %177 = vector.shape_cast %176 : vector<8xf32> to vector<8x1xf32>
    %cst_35 = arith.constant 3.200000e+01 : f32
    %178 = vector.broadcast %cst_35 : f32 to vector<8x1xf32>
    %179 = arith.divf %177, %178 : vector<8x1xf32>
    %180 = vector.broadcast %179 : vector<8x1xf32> to vector<8x32xf32>
    %181 = arith.subf %175, %180 : vector<8x32xf32>
    %182 = arith.mulf %181, %181 : vector<8x32xf32>
    %cst_36 = arith.constant dense<0.000000e+00> : vector<8xf32>
    %183 = vector.multi_reduction <add>, %182, %cst_36 [1] : vector<8x32xf32> to vector<8xf32>
    %184 = vector.shape_cast %183 : vector<8xf32> to vector<8x1xf32>
    %cst_37 = arith.constant 3.200000e+01 : f32
    %185 = vector.broadcast %cst_37 : f32 to vector<8x1xf32>
    %186 = arith.divf %184, %185 : vector<8x1xf32>
    %187 = vector.broadcast %179 : vector<8x1xf32> to vector<8x32xf32>
    %188 = arith.subf %175, %187 : vector<8x32xf32>
    %cst_38 = arith.constant 9.99999974E-6 : f32
    %189 = vector.broadcast %cst_38 : f32 to vector<8x1xf32>
    %190 = arith.addf %186, %189 : vector<8x1xf32>
    %191 = math.rsqrt %190 : vector<8x1xf32>
    %192 = vector.broadcast %191 : vector<8x1xf32> to vector<8x32xf32>
    %193 = arith.mulf %188, %192 : vector<8x32xf32>
    %194 = vector.broadcast %1 : vector<1x32xf32> to vector<8x32xf32>
    %195 = arith.mulf %193, %194 : vector<8x32xf32>
    %196 = vector.broadcast %2 : vector<1x32xf32> to vector<8x32xf32>
    %197 = arith.addf %195, %196 : vector<8x32xf32>
    %198 = arith.truncf %197 : vector<8x32xf32> to vector<8x32xbf16>
    %c0_39 = arith.constant 0 : index
    %c0_40 = arith.constant 0 : index
    %199 = vector.load %arg5[%c0_39, %c0_40] : memref<32x2048xbf16, #tpu.memory_space<vmem>>, vector<32x2048xbf16>
    %cst_41 = arith.constant dense<0.000000e+00> : vector<8x2048xf32>
    %200 = tpu.matmul %198, %199, %cst_41 {dimension_numbers = #tpu.dot_dimension_numbers<[1], [0], [0], [1], [0, 0, 1, 1], [], []>} : vector<8x32xbf16>, vector<32x2048xbf16>, vector<8x2048xf32> -> vector<8x2048xf32>
    %c0_42 = arith.constant 0 : index
    %c0_43 = arith.constant 0 : index
    %201 = vector.load %arg6[%c0_42, %c0_43] : memref<1x2048xf32, #tpu.memory_space<vmem>>, vector<1x2048xf32>
    %202 = vector.broadcast %201 : vector<1x2048xf32> to vector<8x2048xf32>
    %203 = arith.addf %200, %202 : vector<8x2048xf32>
    %cst_44 = arith.constant 0.000000e+00 : f32
    %204 = vector.broadcast %cst_44 : f32 to vector<8x2048xf32>
    %205 = arith.maximumf %203, %204 : vector<8x2048xf32>
    %206 = arith.truncf %205 : vector<8x2048xf32> to vector<8x2048xbf16>
    %c0_45 = arith.constant 0 : index
    %c0_46 = arith.constant 0 : index
    %207 = vector.load %arg7[%c0_45, %c0_46] : memref<2048x32xbf16, #tpu.memory_space<vmem>>, vector<2048x32xbf16>
    %cst_47 = arith.constant dense<0.000000e+00> : vector<8x32xf32>
    %208 = tpu.matmul %206, %207, %cst_47 {dimension_numbers = #tpu.dot_dimension_numbers<[1], [0], [0], [1], [0, 0, 1, 1], [], []>} : vector<8x2048xbf16>, vector<2048x32xbf16>, vector<8x32xf32> -> vector<8x32xf32>
    %209 = vector.broadcast %3 : vector<1x32xf32> to vector<8x32xf32>
    %210 = arith.addf %208, %209 : vector<8x32xf32>
    %211 = arith.addf %197, %210 : vector<8x32xf32>
    %cst_48 = arith.constant dense<0.000000e+00> : vector<8xf32>
    %212 = vector.multi_reduction <add>, %211, %cst_48 [1] : vector<8x32xf32> to vector<8xf32>
    %213 = vector.shape_cast %212 : vector<8xf32> to vector<8x1xf32>
    %cst_49 = arith.constant 3.200000e+01 : f32
    %214 = vector.broadcast %cst_49 : f32 to vector<8x1xf32>
    %215 = arith.divf %213, %214 : vector<8x1xf32>
    %216 = vector.broadcast %215 : vector<8x1xf32> to vector<8x32xf32>
    %217 = arith.subf %211, %216 : vector<8x32xf32>
    %218 = arith.mulf %217, %217 : vector<8x32xf32>
    %cst_50 = arith.constant dense<0.000000e+00> : vector<8xf32>
    %219 = vector.multi_reduction <add>, %218, %cst_50 [1] : vector<8x32xf32> to vector<8xf32>
    %220 = vector.shape_cast %219 : vector<8xf32> to vector<8x1xf32>
    %cst_51 = arith.constant 3.200000e+01 : f32
    %221 = vector.broadcast %cst_51 : f32 to vector<8x1xf32>
    %222 = arith.divf %220, %221 : vector<8x1xf32>
    %223 = vector.broadcast %215 : vector<8x1xf32> to vector<8x32xf32>
    %224 = arith.subf %211, %223 : vector<8x32xf32>
    %cst_52 = arith.constant 9.99999974E-6 : f32
    %225 = vector.broadcast %cst_52 : f32 to vector<8x1xf32>
    %226 = arith.addf %222, %225 : vector<8x1xf32>
    %227 = math.rsqrt %226 : vector<8x1xf32>
    %228 = vector.broadcast %227 : vector<8x1xf32> to vector<8x32xf32>
    %229 = arith.mulf %224, %228 : vector<8x32xf32>
    %230 = vector.broadcast %4 : vector<1x32xf32> to vector<8x32xf32>
    %231 = arith.mulf %229, %230 : vector<8x32xf32>
    %232 = vector.broadcast %5 : vector<1x32xf32> to vector<8x32xf32>
    %233 = arith.addf %231, %232 : vector<8x32xf32>
    %cst_53 = arith.constant 0.000000e+00 : f32
    %234 = vector.broadcast %cst_53 : f32 to vector<8x32xf32>
    %235 = arith.cmpf oge, %233, %234 : vector<8x32xf32>
    %cst_54 = arith.constant 0.00999999977 : f32
    %236 = vector.broadcast %cst_54 : f32 to vector<8x32xf32>
    %237 = arith.mulf %236, %233 : vector<8x32xf32>
    %238 = arith.select %235, %233, %237 : vector<8x32xi1>, vector<8x32xf32>
    %c0_55 = arith.constant 0 : index
    %c0_56 = arith.constant 0 : index
    %239 = vector.load %arg8[%c0_55, %c0_56] : memref<8x32xbf16, #tpu.memory_space<vmem>>, vector<8x32xbf16>
    %240 = arith.truncf %238 : vector<8x32xf32> to vector<8x32xbf16>
    %cst_57 = arith.constant dense<0.000000e+00> : vector<8x8xf32>
    %241 = tpu.matmul %239, %240, %cst_57 {dimension_numbers = #tpu.dot_dimension_numbers<[1], [1], [0], [0], [0, 0, 1, 0], [], []>} : vector<8x32xbf16>, vector<8x32xbf16>, vector<8x8xf32> -> vector<8x8xf32>
    %c0_58 = arith.constant 0 : index
    %c0_59 = arith.constant 0 : index
    %242 = vector.load %arg9[%c0_58, %c0_59] : memref<8x1xf32, #tpu.memory_space<vmem>>, vector<8x1xf32>
    %243 = vector.broadcast %242 : vector<8x1xf32> to vector<8x8xf32>
    %244 = arith.addf %241, %243 : vector<8x8xf32>
    %245 = tpu.iota {dimensions = array<i32: 0>} : vector<8x8xi32>
    %cst_60 = arith.constant 0.000000e+00 : f32
    %246 = vector.broadcast %cst_60 : f32 to vector<8x8xf32>
    %247 = arith.maximumf %244, %246 : vector<8x8xf32>
    %248 = math.absf %244 : vector<8x8xf32>
    %cst_61 = arith.constant 0.000000e+00 : f32
    %249 = vector.broadcast %cst_61 : f32 to vector<8x8xf32>
    %250 = arith.subf %249, %248 : vector<8x8xf32>
    %251 = math.exp %250 : vector<8x8xf32>
    %252 = math.log1p %251 : vector<8x8xf32>
    %253 = arith.addf %247, %252 : vector<8x8xf32>
    %c4_i32 = arith.constant 4 : i32
    %254 = vector.broadcast %c4_i32 : i32 to vector<8x8xi32>
    %255 = arith.cmpi slt, %245, %254 : vector<8x8xi32>
    %256 = math.tanh %244 : vector<8x8xf32>
    %cst_62 = arith.constant 9.99999974E-5 : f32
    %257 = vector.broadcast %cst_62 : f32 to vector<8x8xf32>
    %258 = arith.maximumf %253, %257 : vector<8x8xf32>
    %259 = arith.select %255, %256, %258 : vector<8x8xi1>, vector<8x8xf32>
    %c0_63 = arith.constant 0 : index
    %c0_64 = arith.constant 0 : index
    %260 = vector.load %arg11[%c0_63, %c0_64] : memref<8x8xf32, #tpu.memory_space<vmem>>, vector<8x8xf32>
    tpu.vector_store %arg11[%c0_63, %c0_64], %259 {strides = array<i32>} : memref<8x8xf32, #tpu.memory_space<vmem>>, vector<8x8xf32>,
    return
  }
  func.func @transform_0(%arg0: i32) -> (i32, i32) {
    %c0_i32 = arith.constant 0 : i32
    %c0_i32_0 = arith.constant 0 : i32
    return %arg0, %c0_i32 : i32, i32
  }
  func.func @transform_1(%arg0: i32) -> (i32, i32) {
    %c0_i32 = arith.constant 0 : i32
    %c0_i32_0 = arith.constant 0 : i32
    %c0_i32_1 = arith.constant 0 : i32
    return %c0_i32, %c0_i32_0 : i32, i32
  }
  func.func @transform_2(%arg0: i32) -> (i32, i32) {
    %c0_i32 = arith.constant 0 : i32
    %c0_i32_0 = arith.constant 0 : i32
    %c0_i32_1 = arith.constant 0 : i32
    return %c0_i32, %c0_i32_0 : i32, i32
  }
  func.func @transform_3(%arg0: i32) -> (i32, i32) {
    %c0_i32 = arith.constant 0 : i32
    %c0_i32_0 = arith.constant 0 : i32
    %c0_i32_1 = arith.constant 0 : i32
    return %c0_i32, %c0_i32_0 : i32, i32
  }
  func.func @transform_4(%arg0: i32) -> (i32, i32) {
    %c0_i32 = arith.constant 0 : i32
    %c0_i32_0 = arith.constant 0 : i32
    %c0_i32_1 = arith.constant 0 : i32
    return %c0_i32, %c0_i32_0 : i32, i32
  }
  func.func @transform_5(%arg0: i32) -> (i32, i32) {
    %c0_i32 = arith.constant 0 : i32
    %c0_i32_0 = arith.constant 0 : i32
    %c0_i32_1 = arith.constant 0 : i32
    return %c0_i32, %c0_i32_0 : i32, i32
  }
  func.func @transform_6(%arg0: i32) -> (i32, i32) {
    %c0_i32 = arith.constant 0 : i32
    %c0_i32_0 = arith.constant 0 : i32
    %c0_i32_1 = arith.constant 0 : i32
    return %c0_i32, %c0_i32_0 : i32, i32
  }
  func.func @transform_7(%arg0: i32) -> (i32, i32) {
    %c0_i32 = arith.constant 0 : i32
    %c0_i32_0 = arith.constant 0 : i32
    %c0_i32_1 = arith.constant 0 : i32
    return %c0_i32, %c0_i32_0 : i32, i32
  }
  func.func @transform_8(%arg0: i32) -> (i32, i32) {
    %c0_i32 = arith.constant 0 : i32
    %c0_i32_0 = arith.constant 0 : i32
    %c0_i32_1 = arith.constant 0 : i32
    return %c0_i32, %c0_i32_0 : i32, i32
  }
  func.func @transform_9(%arg0: i32) -> (i32, i32) {
    %c0_i32 = arith.constant 0 : i32
    %c0_i32_0 = arith.constant 0 : i32
    %c0_i32_1 = arith.constant 0 : i32
    return %c0_i32, %c0_i32_0 : i32, i32
  }
  func.func @transform_10(%arg0: i32) -> (i32, i32) {
    %c0_i32 = arith.constant 0 : i32
    %c0_i32_0 = arith.constant 0 : i32
    return %c0_i32, %arg0 : i32, i32
  }
}

</mosaic_0001>

<bundles_post_ra>
// kernel: tpu_custom_call.1
= control target key start
LH: loop header
LB: loop body
LE: loop exit
PB: predicated region body
PF: predicated region fallthrough
CT: control target
= control target key end

     0   :  { %s5488_s0 = inlined_call_operand.vmem [shape: f32[8,128], index: 0, kind: input, shape index: {}]   ;;  %s5489_s1 = inlined_call_operand.vmem [shape: bf16[128,1088], index: 1, kind: input, shape index: {}]   ;;  %s5490_s2 = inlined_call_operand.vmem [shape: f32[1,1088], index: 2, kind: input, shape index: {}]   ;;  %s5491_s3 = inlined_call_operand.vmem [shape: bf16[32,32], index: 3, kind: input, shape index: {}]   ;;  %s5492_s4 = inlined_call_operand.vmem [shape: bf16[32,2048], index: 4, kind: input, shape index: {}]   ;;  %s5493_s5 = inlined_call_operand.vmem [shape: f32[1,2048], index: 5, kind: input, shape index: {}]   ;;  %s5494_s6 = inlined_call_operand.vmem [shape: bf16[2048,32], index: 6, kind: input, shape index: {}]   ;;  %s5495_s7 = inlined_call_operand.vmem [shape: bf16[8,32], index: 7, kind: input, shape index: {}]   ;;  %s5496_s8 = inlined_call_operand.vmem [shape: f32[8,1], index: 8, kind: input, shape index: {}]   ;;  %s5497_s9 = inlined_call_operand.vmem [shape: f32[8,32], index: 9, kind: input, shape index: {}]   ;;  %s5498_s10 = inlined_call_operand.hbm [shape: f32[8,8], index: 10, kind: output, shape index: {}]  }
   0x1   :  { %v3123_v0 = vld [vmem:[%s5489_s1 + $0x1f8] sm:$0xf]  ;;  %v3890_v1 = vld [vmem:[%s5489_s1 + $0x218] sm:$0xf0]  ;;  %v3125_v4 = vld [vmem:[%s5489_s1 + $0x21c] sm:$0xf0] }
   0x2   :  { %v3886_v2 = vld [vmem:[%s5489_s1 + $0x1fc] sm:$0xf]  ;;  %v3124_v3 = vor.u32 %v3890_v1, %v3123_v0  ;;  %v3087_v5 = vld [vmem:[%s5489_s1 + $0x1b0] sm:$0xf]  ;;  %v3881_v6 = vld [vmem:[%s5489_s1 + $0x1d0] sm:$0xf0] }
   0x3   :  { %v3128_v7 = vor.u32 %v3886_v2, %v3125_v4  ;;  %v3877_v8 = vld [vmem:[%s5489_s1 + $0x1b4] sm:$0xf]  ;;  %v3089_v9 = vld [vmem:[%s5489_s1 + $0x1d4] sm:$0xf0]  ;;  %v3131_v10 = vld [vmem:[%s5489_s1 + $0x200] sm:$0xf]  ;;  %v3088_v11 = vor.u32 %v3881_v6, %v3087_v5 }
   0x4   :  { %515 = vmatpush.bf16.msra.mxu0 %v3124_v3  ;;  %v3891_v12 = vld [vmem:[%s5489_s1 + $0x220] sm:$0xf0]  ;;  %v3092_v13 = vor.u32 %v3877_v8, %v3089_v9  ;;  %v3051_v15 = vld [vmem:[%s5489_s1 + $0x168] sm:$0xf]  ;;  %v3872_v16 = vld [vmem:[%s5489_s1 + $0x188] sm:$0xf0] }
   0x5   :  { %528 = vmatpush.bf16.msra.mxu1 %v3128_v7  ;;  %v3132_v14 = vor.u32 %v3891_v12, %v3131_v10  ;;  %v3095_v17 = vld [vmem:[%s5489_s1 + $0x1b8] sm:$0xf]  ;;  %v3868_v18 = vld [vmem:[%s5489_s1 + $0x16c] sm:$0xf]  ;;  %v3053_v19 = vld [vmem:[%s5489_s1 + $0x18c] sm:$0xf0]  ;;  %v3052_v23 = vor.u32 %v3872_v16, %v3051_v15 }
   0x6   :  { %v3882_v20 = vld [vmem:[%s5489_s1 + $0x1d8] sm:$0xf0]  ;;  %v3059_v22 = vld [vmem:[%s5489_s1 + $0x170] sm:$0xf]  ;;  %v3873_v24 = vld [vmem:[%s5489_s1 + $0x190] sm:$0xf0]  ;;  %v3056_v27 = vor.u32 %v3868_v18, %v3053_v19 }
   0x7   :  { %541 = vmatpush.bf16.msra.mxu2 %v3132_v14  ;;  %v3096_v21 = vor.u32 %v3882_v20, %v3095_v17  ;;  %v3887_v25 = vld [vmem:[%s5489_s1 + $0x204] sm:$0xf]  ;;  %v3133_v26 = vld [vmem:[%s5489_s1 + $0x224] sm:$0xf0]  ;;  %v3015_v28 = vld [vmem:[%s5489_s1 + $0x120] sm:$0xf]  ;;  %v3060_v33 = vor.u32 %v3873_v24, %v3059_v22 }
   0x8   :  { %516 = vmatpush.bf16.msra.mxu0 %v3088_v11  ;;  %v3863_v29 = vld [vmem:[%s5489_s1 + $0x140] sm:$0xf0]  ;;  %v3136_v30 = vor.u32 %v3887_v25, %v3133_v26  ;;  %v3017_v32 = vld [vmem:[%s5489_s1 + $0x144] sm:$0xf0]  ;;  %v3878_v34 = vld [vmem:[%s5489_s1 + $0x1bc] sm:$0xf] }
   0x9   :  { %529 = vmatpush.bf16.msra.mxu1 %v3092_v13  ;;  %v3859_v31 = vld [vmem:[%s5489_s1 + $0x124] sm:$0xf]  ;;  %v3097_v35 = vld [vmem:[%s5489_s1 + $0x1dc] sm:$0xf0]  ;;  %v3016_v36 = vor.u32 %v3863_v29, %v3015_v28  ;;  %v3023_v37 = vld [vmem:[%s5489_s1 + $0x128] sm:$0xf] }
   0xa   :  { %554 = vmatpush.bf16.msra.mxu3 %v3136_v30  ;;  %v3864_v38 = vld [vmem:[%s5489_s1 + $0x148] sm:$0xf0]  ;;  %v3100_v39 = vor.u32 %v3878_v34, %v3097_v35  ;;  %v3020_v40 = vor.u32 %v3859_v31, %v3017_v32  ;;  %v2979_v41 = vld [vmem:[%s5489_s1 + $0xd8] sm:$0xf]  ;;  %v3854_v42 = vld [vmem:[%s5489_s1 + $0xf8] sm:$0xf0] }
   0xb   :  { %542 = vmatpush.bf16.msra.mxu2 %v3096_v21  ;;  %v3869_v43 = vld [vmem:[%s5489_s1 + $0x174] sm:$0xf]  ;;  %v3850_v44 = vld [vmem:[%s5489_s1 + $0xdc] sm:$0xf]  ;;  %v2981_v45 = vld [vmem:[%s5489_s1 + $0xfc] sm:$0xf0]  ;;  %v3024_v47 = vor.u32 %v3864_v38, %v3023_v37  ;;  %v2980_v50 = vor.u32 %v3854_v42, %v2979_v41 }
   0xc   :  { %517 = vmatpush.bf16.msra.mxu0 %v3052_v23  ;;  %v3061_v46 = vld [vmem:[%s5489_s1 + $0x194] sm:$0xf0]  ;;  %v2987_v48 = vld [vmem:[%s5489_s1 + $0xe0] sm:$0xf]  ;;  %v3855_v51 = vld [vmem:[%s5489_s1 + $0x100] sm:$0xf0]  ;;  %v2984_v54 = vor.u32 %v3850_v44, %v2981_v45 }
   0xd   :  { %530 = vmatpush.bf16.msra.mxu1 %v3056_v27  ;;  %v3064_v49 = vor.u32 %v3869_v43, %v3061_v46  ;;  %v3860_v52 = vld [vmem:[%s5489_s1 + $0x12c] sm:$0xf]  ;;  %v3025_v53 = vld [vmem:[%s5489_s1 + $0x14c] sm:$0xf0]  ;;  %v3845_v56 = vld [vmem:[%s5489_s1 + $0xb0] sm:$0xf0]  ;;  %v2988_v59 = vor.u32 %v3855_v51, %v2987_v48 }
   0xe   :  { %555 = vmatpush.bf16.msra.mxu3 %v3100_v39  ;;  %v2943_v55 = vld [vmem:[%s5489_s1 + $0x90] sm:$0xf]  ;;  %v3841_v57 = vld [vmem:[%s5489_s1 + $0x94] sm:$0xf]  ;;  %v2945_v58 = vld [vmem:[%s5489_s1 + $0xb4] sm:$0xf0]  ;;  %v3028_v61 = vor.u32 %v3860_v52, %v3025_v53 }
   0xf   :  { %543 = vmatpush.bf16.msra.mxu2 %v3060_v33  ;;  %v2951_v60 = vld [vmem:[%s5489_s1 + $0x98] sm:$0xf]  ;;  %v2944_v62 = vor.u32 %v3845_v56, %v2943_v55  ;;  %v3846_v63 = vld [vmem:[%s5489_s1 + $0xb8] sm:$0xf0]  ;;  %v3851_v0 = vld [vmem:[%s5489_s1 + $0xe4] sm:$0xf]  ;;  %v2948_v2 = vor.u32 %v3841_v57, %v2945_v58 }
  0x10   :  { %518 = vmatpush.bf16.msra.mxu0 %v3016_v36  ;;  %v2989_v1 = vld [vmem:[%s5489_s1 + $0x104] sm:$0xf0]  ;;  %v3836_v4 = vld [vmem:[%s5489_s1 + $0x68] sm:$0xf0]  ;;  %v2909_v6 = vld [vmem:[%s5489_s1 + $0x6c] sm:$0xf0]  ;;  %v2952_v7 = vor.u32 %v3846_v63, %v2951_v60 }
  0x11   :  { %531 = vmatpush.bf16.msra.mxu1 %v3020_v40  ;;  %v2907_v3 = vld [vmem:[%s5489_s1 + $0x48] sm:$0xf]  ;;  %v3832_v5 = vld [vmem:[%s5489_s1 + $0x4c] sm:$0xf]  ;;  %v2915_v8 = vld [vmem:[%s5489_s1 + $0x50] sm:$0xf]  ;;  %v2992_v9 = vor.u32 %v3851_v0, %v2989_v1 }
  0x12   :  { %556 = vmatpush.bf16.msra.mxu3 %v3064_v49  ;;  %v2908_v10 = vor.u32 %v3836_v4, %v2907_v3  ;;  %v3837_v11 = vld [vmem:[%s5489_s1 + $0x70] sm:$0xf0]  ;;  %v3842_v12 = vld [vmem:[%s5489_s1 + $0x9c] sm:$0xf]  ;;  %v2953_v13 = vld [vmem:[%s5489_s1 + $0xbc] sm:$0xf0]  ;;  %v2912_v14 = vor.u32 %v3832_v5, %v2909_v6 }
  0x13   :  { %544 = vmatpush.bf16.msra.mxu2 %v3024_v47  ;;  %v2871_v15 = vld [vmem:[%s5489_s1] sm:$0xf]  ;;  %v3827_v16 = vld [vmem:[%s5489_s1 + $0x20] sm:$0xf0]  ;;  %v2873_v18 = vld [vmem:[%s5489_s1 + $0x24] sm:$0xf0]  ;;  %v2916_v21 = vor.u32 %v3837_v11, %v2915_v8  ;;  %v2956_v25 = vor.u32 %v3842_v12, %v2953_v13 }
  0x14   :  { %519 = vmatpush.bf16.msra.mxu0 %v2980_v50  ;;  %v3823_v17 = vld [vmem:[%s5489_s1 + $0x4] sm:$0xf]  ;;  %v3139_v19 = vld [vmem:[%s5489_s1 + $0x208] sm:$0xf]  ;;  %v3892_v20 = vld [vmem:[%s5489_s1 + $0x228] sm:$0xf0]  ;;  %v2872_v26 = vor.u32 %v3827_v16, %v2871_v15 }
  0x15   :  { %532 = vmatpush.bf16.msra.mxu1 %v2984_v54  ;;  %v43_v22 = vld [vmem:[%s5488_s0] sm:$0xff]  ;;  %v2879_v23 = vld [vmem:[%s5489_s1 + $0x8] sm:$0xf]  ;;  %v3828_v24 = vld [vmem:[%s5489_s1 + $0x28] sm:$0xf0]  ;;  %v2876_v29 = vor.u32 %v3823_v17, %v2873_v18  ;;  %v3140_v30 = vor.u32 %v3892_v20, %v3139_v19 }
  0x16   :  { %557 = vmatpush.bf16.msra.mxu3 %v3028_v61  ;;  %v3833_v27 = vld [vmem:[%s5489_s1 + $0x54] sm:$0xf]  ;;  %v2917_v28 = vld [vmem:[%s5489_s1 + $0x74] sm:$0xf0]  ;;  %v3103_v31 = vld [vmem:[%s5489_s1 + $0x1c0] sm:$0xf]  ;;  %v4422_v33 = vpack.c.bf16 %v43_v22, %v43_v22  ;;  %v2880_v34 = vor.u32 %v3828_v24, %v2879_v23 }
  0x17   :  { %545 = vmatpush.bf16.msra.mxu2 %v2988_v59  ;;  %v3883_v32 = vld [vmem:[%s5489_s1 + $0x1e0] sm:$0xf0] }
  0x18   :  { %520 = vmatpush.bf16.msra.mxu0 %v2944_v62 }
  0x19   :  { %533 = vmatpush.bf16.msra.mxu1 %v2948_v2 }
  0x1a   :  { %558 = vmatpush.bf16.msra.mxu3 %v2992_v9 }
  0x1b   :  { %546 = vmatpush.bf16.msra.mxu2 %v2952_v7 }
  0x1c   :  { %521 = vmatpush.bf16.msra.mxu0 %v2908_v10 }
  0x1d   :  { %534 = vmatpush.bf16.msra.mxu1 %v2912_v14 }
  0x1e   :  { %559 = vmatpush.bf16.msra.mxu3 %v2956_v25 }
  0x1f   :  { %547 = vmatpush.bf16.msra.mxu2 %v2916_v21 }
  0x20   :  { %15 = vsyncpa [#allocation3], 0  ;;  %522 = vmatpush.bf16.msra.mxu0 %v2872_v26  ;;  %v2920_v35 = vor.u32 %v3833_v27, %v2917_v28  ;;  %v3104_v36 = vor.u32 %v3883_v32, %v3103_v31  ;;  %v3824_v37 = vld [vmem:[%s5489_s1 + $0xc] sm:$0xf]  ;;  %v2881_v38 = vld [vmem:[%s5489_s1 + $0x2c] sm:$0xf0] }
  0x21   :  { %535 = vmatpush.bf16.msra.mxu1 %v2876_v29  ;;  %v3067_v39 = vld [vmem:[%s5489_s1 + $0x178] sm:$0xf]  ;;  %v3874_v40 = vld [vmem:[%s5489_s1 + $0x198] sm:$0xf0]  ;;  %v2884_v41 = vor.u32 %v3824_v37, %v2881_v38  ;;  %v3031_v43 = vld [vmem:[%s5489_s1 + $0x130] sm:$0xf] }
  0x22   :  { %560 = vmatpush.bf16.msra.mxu3 %v2920_v35  ;;  %v3068_v42 = vor.u32 %v3874_v40, %v3067_v39  ;;  %v3865_v44 = vld [vmem:[%s5489_s1 + $0x150] sm:$0xf0]  ;;  %v2995_v46 = vld [vmem:[%s5489_s1 + $0xe8] sm:$0xf]  ;;  %v3856_v47 = vld [vmem:[%s5489_s1 + $0x108] sm:$0xf0] }
  0x23   :  { %523 = vmatmul.bf16.vlgmr.msra.gmra.mxu0 %v4422_v33  ;;  %548 = vmatpush.bf16.msra.mxu2 %v2880_v34  ;;  %v3032_v45 = vor.u32 %v3865_v44, %v3031_v43  ;;  %v2996_v48 = vor.u32 %v3856_v47, %v2995_v46  ;;  %v2959_v49 = vld [vmem:[%s5489_s1 + $0xa0] sm:$0xf]  ;;  %v3847_v50 = vld [vmem:[%s5489_s1 + $0xc0] sm:$0xf0]  ;;  %v2923_v52 = vld [vmem:[%s5489_s1 + $0x58] sm:$0xf] }
  0x24   :  { %567 = vmatpush.bf16.msrb.mxu0 %v3140_v30  ;;  %536 = vmatmul.bf16.vlgmr.msra.gmra.mxu1 %v4422_v33  ;;  %v2960_v51 = vor.u32 %v3847_v50, %v2959_v49  ;;  %v3838_v53 = vld [vmem:[%s5489_s1 + $0x78] sm:$0xf0]  ;;  %v2887_v55 = vld [vmem:[%s5489_s1 + $0x10] sm:$0xf]  ;;  %v3829_v56 = vld [vmem:[%s5489_s1 + $0x30] sm:$0xf0] }
  0x25   :  { %v2924_v54 = vor.u32 %v3838_v53, %v2923_v52  ;;  %v3155_v57 = vld [vmem:[%s5489_s1 + $0x218] sm:$0xf]  ;;  %v3894_v58 = vld [vmem:[%s5489_s1 + $0x238] sm:$0xf0]  ;;  %v2888_v59 = vor.u32 %v3829_v56, %v2887_v55  ;;  %v3119_v61 = vld [vmem:[%s5489_s1 + $0x1d0] sm:$0xf] }
  0x26   :  { %549 = vmatmul.bf16.vlgmr.msra.gmra.mxu2 %v4422_v33  ;;  %561 = vmatpush.bf16.msra.mxu3 %v2884_v41  ;;  %v3156_v60 = vor.u32 %v3894_v58, %v3155_v57  ;;  %v3885_v62 = vld [vmem:[%s5489_s1 + $0x1f0] sm:$0xf0]  ;;  %v3083_v0 = vld [vmem:[%s5489_s1 + $0x188] sm:$0xf]  ;;  %v3876_v1 = vld [vmem:[%s5489_s1 + $0x1a8] sm:$0xf0] }
  0x27   :  { %v3120_v63 = vor.u32 %v3885_v62, %v3119_v61  ;;  %v3084_v2 = vor.u32 %v3876_v1, %v3083_v0  ;;  %v3047_v3 = vld [vmem:[%s5489_s1 + $0x140] sm:$0xf]  ;;  %v3867_v4 = vld [vmem:[%s5489_s1 + $0x160] sm:$0xf0]  ;;  %v3011_v6 = vld [vmem:[%s5489_s1 + $0xf8] sm:$0xf] }
  0x28   :  { %568 = vmatpush.bf16.msrb.mxu0 %v3104_v36  ;;  %v3048_v5 = vor.u32 %v3867_v4, %v3047_v3  ;;  %v3858_v7 = vld [vmem:[%s5489_s1 + $0x118] sm:$0xf0]  ;;  %v2975_v9 = vld [vmem:[%s5489_s1 + $0xb0] sm:$0xf]  ;;  %v3849_v10 = vld [vmem:[%s5489_s1 + $0xd0] sm:$0xf0] }
  0x29   :  { %562 = vmatmul.bf16.vlgmr.msra.gmra.mxu3 %v4422_v33  ;;  %v3012_v8 = vor.u32 %v3858_v7, %v3011_v6  ;;  %v2976_v11 = vor.u32 %v3849_v10, %v2975_v9  ;;  %v2939_v12 = vld [vmem:[%s5489_s1 + $0x68] sm:$0xf]  ;;  %v3840_v13 = vld [vmem:[%s5489_s1 + $0x88] sm:$0xf0]  ;;  %v2903_v15 = vld [vmem:[%s5489_s1 + $0x20] sm:$0xf] }
  0x2a   :  { %v2940_v14 = vor.u32 %v3840_v13, %v2939_v12  ;;  %v3831_v16 = vld [vmem:[%s5489_s1 + $0x40] sm:$0xf0]  ;;  %s4145_s25 = smov 64   ;;  %s4146_s26 = smov 32   ;;  %v4096_v38 = vld [vmem:[%s5490_s2 + $0x8] ss:$0 sm:$0xff] }
  0x2b   :  { %v2904_v17 = vor.u32 %v3831_v16, %v2903_v15  ;;  %v4523_v18 = vld [vmem:[%s5490_s2] sm:$0xff]  ;;  %s4147_s27 = smov 96   ;;  %vm641_vm0 = vcmask 261120   ;;  %vm801_vm1 = vcmask 7168   ;;  %vm803_vm2 = vcmask 15360   ;;  %s2860_s14 = sshll.u32 %s5498_s10, 4  ;;  %s2861_s14 = int_to_ptr.hbm [resolvable:$true] %s2860_s14 }
  0x2c   :  { %569 = vmatpush.bf16.msrb.mxu0 %v3068_v42  ;;  %v129_v19 = vperm.slane %v4523_v18, 0  ;;  %v130_v20 = vperm.slane %v4523_v18, 1  ;;  %v131_v28 = vperm.slane %v4523_v18, 2  ;;  %v132_v32 = vperm.slane %v4523_v18, 3 }
  0x2d   :  { %vm805_vm3 = vcmask 23552   ;;  %vm807_vm4 = vcmask 31744   ;;  %vm809_vm5 = vcmask 39936   ;;  %vm811_vm6 = vcmask 48128  }
  0x2e   :  { %vm813_vm7 = vcmask 56320   ;;  %vm815_vm8 = vcmask 64512   ;;  %vm817_vm9 = vcmask 72704   ;;  %vm819_vm10 = vcmask 80896  }
  0x2f   :  { %vm821_vm11 = vcmask 89088   ;;  %vm823_vm12 = vcmask 97280   ;;  %vm825_vm13 = vcmask 105472   ;;  %vm827_vm14 = vcmask 113664  }
  0x30   :  { %570 = vmatpush.bf16.msrb.mxu0 %v3032_v45  ;;  %vm829_vm15 = vcmask 121856  }
  0x34   :  { %571 = vmatpush.bf16.msrb.mxu0 %v2996_v48 }
  0x38   :  { %572 = vmatpush.bf16.msrb.mxu0 %v2960_v51 }
  0x3c   :  { %573 = vmatpush.bf16.msrb.mxu0 %v2924_v54 }
  0x40   :  { %574 = vmatpush.bf16.msrb.mxu0 %v2888_v59 }
  0x43   :  { %575 = vmatmul.bf16.vlgmr.msrb.gmra.mxu0 %v4422_v33 }
  0x44   :  { %619 = vmatpush.bf16.msra.mxu0 %v3156_v60 }
  0x48   :  { %620 = vmatpush.bf16.msra.mxu0 %v3120_v63 }
  0x4c   :  { %621 = vmatpush.bf16.msra.mxu0 %v3084_v2 }
  0x50   :  { %622 = vmatpush.bf16.msra.mxu0 %v3048_v5 }
  0x54   :  { %623 = vmatpush.bf16.msra.mxu0 %v3012_v8 }
  0x58   :  { %624 = vmatpush.bf16.msra.mxu0 %v2976_v11 }
  0x5c   :  { %625 = vmatpush.bf16.msra.mxu0 %v2940_v14 }
  0x60   :  { %626 = vmatpush.bf16.msra.mxu0 %v2904_v17 }
  0x63   :  { %627 = vmatmul.bf16.vlgmr.msra.gmra.mxu0 %v4422_v33 }
  0xa0   :  { %v524_v21 = vpop.f32.mrf.mxu0 }
  0xa1   :  { %v525_v22 = vadd.f32 %v524_v21, %v129_v19  ;;  %v537_v23 = vpop.f32.mrf.mxu1 }
  0xa2   :  { %v538_v24 = vadd.f32 %v537_v23, %v130_v20 }
  0xa3   :  { %664 = vrot.lane.b32.xlu1 %v525_v22, %s4145_s25  ;;  %633 = vrot.lane.b32.xlu0 %v525_v22, %s4146_s26 }
  0xa4   :  { %695 = vrot.lane.b32.xlu2 %v538_v24, %s4147_s27 }
  0xa8   :  { %v526_v25 = vpop.f32.mrf.mxu0 }
  0xa9   :  { %v539_v26 = vpop.f32.mrf.mxu1  ;;  %v550_v27 = vpop.f32.mrf.mxu2 }
  0xaa   :  { %v551_v30 = vadd.f32 %v550_v27, %v131_v28 }
  0xab   :  { %676 = vrot.lane.b32.xlu1 %v538_v24, %s4146_s26  ;;  %653 = vrot.lane.b32.xlu0 %v525_v22, %s4147_s27 }
  0xac   :  { %706 = vrot.lane.b32.xlu2 %v538_v24, %s4145_s25  ;;  %v563_v29 = vpop.f32.mrf.mxu3 }
  0xad   :  { %v564_v35 = vadd.f32 %v563_v29, %v132_v32 }
  0xb1   :  { %v552_v31 = vpop.f32.mrf.mxu2 }
  0xb3   :  { %737 = vrot.lane.b32.xlu1 %v551_v30, %s4147_s27  ;;  %718 = vrot.lane.b32.xlu0 %v551_v30, %s4146_s26 }
  0xb4   :  { %748 = vrot.lane.b32.xlu2 %v551_v30, %s4145_s25  ;;  %v565_v34 = vpop.f32.mrf.mxu3 }
  0xbb   :  { %779 = vrot.lane.b32.xlu1 %v564_v35, %s4147_s27  ;;  %760 = vrot.lane.b32.xlu0 %v564_v35, %s4146_s26 }
  0xbc   :  { %790 = vrot.lane.b32.xlu2 %v564_v35, %s4145_s25 }
  0xc0   :  { %v4541_v36 = vpop.f32.mrf.mxu0 }
  0xc8   :  { %v578_v37 = vpop.f32.mrf.mxu0 }
  0xe0   :  { %v628_v39 = vpop.f32.mrf.mxu0 }
  0xe1   :  { %v4546_v40 = vadd.f32 %v4096_v38, %v628_v39 }
  0xe3   :  { %v687_v41 = vmul.f32 %v4546_v40, %v538_v24  ;;  %v729_v42 = vmul.f32 %v4546_v40, %v551_v30  ;;  %v645_v43 = vmul.f32 %v4546_v40, %v525_v22  ;;  %v771_v45 = vmul.f32 %v4546_v40, %v564_v35 }
  0xe5   :  { %689 = vrot.lane.b32.xlu2 %v687_v41, %s4147_s27  ;;  %731 = vrot.lane.b32.xlu0 %v729_v42, %s4147_s27 }
  0xe6   :  { %647 = vrot.lane.b32.xlu1 %v645_v43, %s4147_s27 }
  0xe8   :  { %v630_v44 = vpop.f32.mrf.mxu0 }
  0xee   :  { %773 = vrot.lane.b32.xlu1 %v771_v45, %s4147_s27 }
  0xfe   :  { %v696_v46 = vpop.permute.xlu2 %695 }
  0xff   :  { %v698_v57 = vmul.f32 %v696_v46, %v4546_v40 }
 0x106   :  { %v707_v55 = vpop.permute.xlu2 %706 }
 0x107   :  { %v709_v59 = vmul.f32 %v707_v55, %v4546_v40 }
 0x10e   :  { %v749_v60 = vpop.permute.xlu2 %748 }
 0x10f   :  { %v751_v63 = vmul.f32 %v749_v60, %v4546_v40 }
 0x115   :  { %v665_v47 = vpop.permute.xlu1 %664  ;;  %v634_v48 = vpop.permute.xlu0 %633 }
 0x116   :  { %v636_v49 = vmul.f32 %v634_v48, %v4546_v40  ;;  %v667_v52 = vmul.f32 %v665_v47, %v4546_v40  ;;  %v791_v2 = vpop.permute.xlu2 %790 }
 0x117   :  { %v793_v4 = vmul.f32 %v791_v2, %v4546_v40 }
 0x118   :  { %638 = vrot.lane.b32.xlu0 %v636_v49, %s4147_s27 }
 0x11d   :  { %v677_v50 = vpop.permute.xlu1 %676  ;;  %v654_v51 = vpop.permute.xlu0 %653 }
 0x11e   :  { %v679_v53 = vmul.f32 %v677_v50, %v4546_v40  ;;  %v656_v54 = vmul.f32 %v654_v51, %v4546_v40 }
 0x120   :  { %669 = vrot.lane.b32.xlu0 %v667_v52, %s4147_s27  ;;  %658 = vrot.lane.b32.xlu2 %v656_v54, %s4147_s27 }
 0x121   :  { %681 = vrot.lane.b32.xlu1 %v679_v53, %s4147_s27 }
 0x125   :  { %v719_v56 = vpop.permute.xlu0 %718  ;;  %v738_v61 = vpop.permute.xlu1 %737 }
 0x126   :  { %v721_v58 = vmul.f32 %v719_v56, %v4546_v40  ;;  %v740_v1 = vmul.f32 %v738_v61, %v4546_v40 }
 0x128   :  { %700 = vrot.lane.b32.xlu0 %v698_v57, %s4147_s27  ;;  %723 = vrot.lane.b32.xlu2 %v721_v58, %s4147_s27 }
 0x129   :  { %711 = vrot.lane.b32.xlu1 %v709_v59, %s4147_s27 }
 0x12d   :  { %v761_v62 = vpop.permute.xlu0 %760  ;;  %v780_v3 = vpop.permute.xlu1 %779 }
 0x12e   :  { %v763_v0 = vmul.f32 %v761_v62, %v4546_v40  ;;  %v782_v5 = vmul.f32 %v780_v3, %v4546_v40 }
 0x130   :  { %753 = vrot.lane.b32.xlu2 %v751_v63, %s4147_s27  ;;  %765 = vrot.lane.b32.xlu0 %v763_v0, %s4147_s27 }
 0x131   :  { %742 = vrot.lane.b32.xlu1 %v740_v1, %s4147_s27 }
 0x138   :  { %784 = vrot.lane.b32.xlu2 %v782_v5, %s4147_s27  ;;  %795 = vrot.lane.b32.xlu0 %v793_v4, %s4147_s27 }
 0x13f   :  { %v690_v10 = vpop.permute.xlu2 %689 }
 0x140   :  { %v692_v11 = vsel %vm641_vm0, %v690_v10, 0.0  ;;  %v3888_v10 = vld [vmem:[%s5489_s1 + $0x20c] sm:$0xf] }
 0x157   :  { %v732_v7 = vpop.permute.xlu0 %731 }
 0x158   :  { %v648_v6 = vpop.permute.xlu1 %647  ;;  %v734_v9 = vsel %vm641_vm0, %v732_v7, 0.0 }
 0x159   :  { %v650_v8 = vsel %vm641_vm0, %v648_v6, 0.0 }
 0x160   :  { %v774_v15 = vpop.permute.xlu1 %773 }
 0x161   :  { %651 = vadd.xlane.f32.xlu2 %v650_v8  ;;  %v776_v41 = vsel %vm641_vm0, %v774_v15, 0.0  ;;  %v3879_v15 = vld [vmem:[%s5489_s1 + $0x1c4] sm:$0xf] }
 0x162   :  { %735 = vadd.xlane.f32.xlu0 %v734_v9 }
 0x169   :  { %693 = vadd.xlane.f32.xlu2 %v692_v11  ;;  %v3141_v11 = vld [vmem:[%s5489_s1 + $0x22c] sm:$0xf0] }
 0x17a   :  { %v659_v12 = vpop.permute.xlu2 %658 }
 0x17b   :  { %v661_v13 = vsel %vm641_vm0, %v659_v12, 0.0  ;;  %v3147_v12 = vld [vmem:[%s5489_s1 + $0x210] sm:$0xf] }
 0x17c   :  { %662 = vadd.xlane.f32.xlu0 %v661_v13  ;;  %v3144_v13 = vor.u32 %v3888_v10, %v3141_v11 }
 0x17e   :  { %580 = vmatpush.bf16.msrb.mxu1 %v3144_v13  ;;  %v2889_v13 = vld [vmem:[%s5489_s1 + $0x34] sm:$0xf0] }
 0x182   :  { %v724_v21 = vpop.permute.xlu2 %723 }
 0x183   :  { %v726_v26 = vsel %vm641_vm0, %v724_v21, 0.0 }
 0x18a   :  { %v639_v14 = vpop.permute.xlu0 %638  ;;  %v754_v28 = vpop.permute.xlu2 %753 }
 0x18b   :  { %v642_v16 = vsel %vm641_vm0, %v639_v14, 0.0  ;;  %v756_v32 = vsel %vm641_vm0, %v754_v28, 0.0  ;;  %v3893_v14 = vld [vmem:[%s5489_s1 + $0x230] sm:$0xf0]  ;;  %v3149_v28 = vld [vmem:[%s5489_s1 + $0x234] sm:$0xf0] }
 0x18c   :  { %643 = vadd.xlane.f32.xlu1 %v642_v16  ;;  %v3105_v16 = vld [vmem:[%s5489_s1 + $0x1e4] sm:$0xf0] }
 0x18d   :  { %v3108_v21 = vor.u32 %v3879_v15, %v3105_v16  ;;  %v2895_v15 = vld [vmem:[%s5489_s1 + $0x18] sm:$0xf]  ;;  %v3830_v16 = vld [vmem:[%s5489_s1 + $0x38] sm:$0xf0] }
 0x18f   :  { %581 = vmatpush.bf16.msrb.mxu1 %v3108_v21  ;;  %v2896_v21 = vor.u32 %v3830_v16, %v2895_v15  ;;  %v136_v15 = vperm.slane %v4523_v18, 7 }
 0x192   :  { %v670_v17 = vpop.permute.xlu0 %669  ;;  %v785_v35 = vpop.permute.xlu2 %784 }
 0x193   :  { %v682_v19 = vpop.permute.xlu1 %681  ;;  %v672_v20 = vsel %vm641_vm0, %v670_v17, 0.0  ;;  %v787_v39 = vsel %vm641_vm0, %v785_v35, 0.0  ;;  %v3148_v17 = vor.u32 %v3893_v14, %v3147_v12  ;;  %v3861_v35 = vld [vmem:[%s5489_s1 + $0x134] sm:$0xf] }
 0x194   :  { %673 = vadd.xlane.f32.xlu2 %v672_v20  ;;  %v684_v22 = vsel %vm641_vm0, %v682_v19, 0.0  ;;  %v3111_v19 = vld [vmem:[%s5489_s1 + $0x1c8] sm:$0xf]  ;;  %v3884_v20 = vld [vmem:[%s5489_s1 + $0x1e8] sm:$0xf0] }
 0x195   :  { %685 = vadd.xlane.f32.xlu1 %v684_v22  ;;  %593 = vmatpush.bf16.msrb.mxu2 %v3148_v17  ;;  %v3112_v22 = vor.u32 %v3884_v20, %v3111_v19  ;;  %v3825_v12 = vld [vmem:[%s5489_s1 + $0x14] sm:$0xf]  ;;  %v3835_v17 = vld [vmem:[%s5489_s1 + $0x64] sm:$0xf]  ;;  %v2933_v19 = vld [vmem:[%s5489_s1 + $0x84] sm:$0xf0] }
 0x196   :  { %v2892_v20 = vor.u32 %v3825_v12, %v2889_v13 }
 0x199   :  { %594 = vmatpush.bf16.msrb.mxu2 %v3112_v22  ;;  %v2936_v22 = vor.u32 %v3835_v17, %v2933_v19 }
 0x19a   :  { %v701_v23 = vpop.permute.xlu0 %700 }
 0x19b   :  { %v712_v24 = vpop.permute.xlu1 %711  ;;  %v703_v25 = vsel %vm641_vm0, %v701_v23, 0.0  ;;  %v3870_v23 = vld [vmem:[%s5489_s1 + $0x17c] sm:$0xf] }
 0x19c   :  { %704 = vadd.xlane.f32.xlu0 %v703_v25  ;;  %727 = vadd.xlane.f32.xlu2 %v726_v26  ;;  %v714_v27 = vsel %vm641_vm0, %v712_v24, 0.0  ;;  %v3069_v24 = vld [vmem:[%s5489_s1 + $0x19c] sm:$0xf0]  ;;  %v3889_v25 = vld [vmem:[%s5489_s1 + $0x214] sm:$0xf] }
 0x19d   :  { %715 = vadd.xlane.f32.xlu1 %v714_v27  ;;  %v3075_v26 = vld [vmem:[%s5489_s1 + $0x180] sm:$0xf]  ;;  %v3875_v27 = vld [vmem:[%s5489_s1 + $0x1a0] sm:$0xf0] }
 0x1a2   :  { %v766_v29 = vpop.permute.xlu0 %765 }
 0x1a3   :  { %v743_v30 = vpop.permute.xlu1 %742  ;;  %v768_v31 = vsel %vm641_vm0, %v766_v29, 0.0  ;;  %v3152_v29 = vor.u32 %v3889_v25, %v3149_v28  ;;  %v3826_v25 = vld [vmem:[%s5489_s1 + $0x1c] sm:$0xf]  ;;  %v4148_v28 = vmov 3  }
 0x1a4   :  { %769 = vadd.xlane.f32.xlu0 %v768_v31  ;;  %757 = vadd.xlane.f32.xlu2 %v756_v32  ;;  %v745_v34 = vsel %vm641_vm0, %v743_v30, 0.0  ;;  %v3880_v30 = vld [vmem:[%s5489_s1 + $0x1cc] sm:$0xf]  ;;  %v3072_v31 = vor.u32 %v3870_v23, %v3069_v24  ;;  %v3113_v32 = vld [vmem:[%s5489_s1 + $0x1ec] sm:$0xf0] }
 0x1a5   :  { %746 = vadd.xlane.f32.xlu1 %v745_v34  ;;  %v3076_v34 = vor.u32 %v3875_v27, %v3075_v26  ;;  %606 = vmatpush.bf16.msrb.mxu3 %v3152_v29  ;;  %v2897_v26 = vld [vmem:[%s5489_s1 + $0x3c] sm:$0xf0]  ;;  %v4149_v29 = vmov 2  }
 0x1a6   :  { %582 = vmatpush.bf16.msrb.mxu1 %v3072_v31  ;;  %v2900_v27 = vor.u32 %v3826_v25, %v2897_v26  ;;  %4080 = vset.pattern.permute.xlu2 %v4148_v28 }
 0x1a7   :  { %595 = vmatpush.bf16.msrb.mxu2 %v3076_v34  ;;  %4079 = vset.pattern.permute.xlu1 %v4149_v29 }
 0x1aa   :  { %v796_v37 = vpop.permute.xlu0 %795 }
 0x1ab   :  { %v798_v38 = vsel %vm641_vm0, %v796_v37, 0.0  ;;  %v3033_v37 = vld [vmem:[%s5489_s1 + $0x154] sm:$0xf0] }
 0x1ac   :  { %799 = vadd.xlane.f32.xlu0 %v798_v38  ;;  %788 = vadd.xlane.f32.xlu2 %v787_v39  ;;  %v3039_v38 = vld [vmem:[%s5489_s1 + $0x138] sm:$0xf]  ;;  %v3116_v39 = vor.u32 %v3880_v30, %v3113_v32  ;;  %v4150_v30 = vmov 1  }
 0x1ad   :  { %777 = vadd.xlane.f32.xlu1 %v776_v41  ;;  %v3866_v41 = vld [vmem:[%s5489_s1 + $0x158] sm:$0xf0]  ;;  %4078 = vset.pattern.permute.xlu0 %v4150_v30 }
 0x1ae   :  { %607 = vmatpush.bf16.msrb.mxu3 %v3116_v39 }
 0x1d4   :  { %v652_v42 = vpop.xlane.xlu2 %651 }
 0x1d5   :  { %v736_v43 = vpop.xlane.xlu0 %735 }
 0x1dc   :  { %v694_v44 = vpop.xlane.xlu2 %693 }
 0x1ef   :  { %v663_v47 = vpop.xlane.xlu0 %662 }
 0x1ff   :  { %v644_v45 = vpop.xlane.xlu1 %643 }
 0x200   :  { %v802_v46 = vsel %vm801_vm1, %v644_v45, %v652_v42  ;;  %vm831_vm1 = vcmask 130048   ;;  %v3871_v42 = vld [vmem:[%s5489_s1 + $0x184] sm:$0xf]  ;;  %v3040_v45 = vor.u32 %v3866_v41, %v3039_v38 }
 0x201   :  { %v804_v49 = vsel %vm803_vm2, %v802_v46, %v663_v47  ;;  %v3852_v46 = vld [vmem:[%s5489_s1 + $0xec] sm:$0xf]  ;;  %v2997_v47 = vld [vmem:[%s5489_s1 + $0x10c] sm:$0xf0] }
 0x202   :  { %596 = vmatpush.bf16.msrb.mxu2 %v3040_v45  ;;  %v4151_v45 = vmov 6  }
 0x207   :  { %v674_v48 = vpop.xlane.xlu2 %673 }
 0x208   :  { %v686_v50 = vpop.xlane.xlu1 %685  ;;  %v806_v51 = vsel %vm805_vm3, %v804_v49, %v674_v48  ;;  %v3003_v48 = vld [vmem:[%s5489_s1 + $0xf0] sm:$0xf] }
 0x209   :  { %v808_v52 = vsel %vm807_vm4, %v806_v51, %v686_v50  ;;  %v3857_v50 = vld [vmem:[%s5489_s1 + $0x110] sm:$0xf0]  ;;  %v3862_v51 = vld [vmem:[%s5489_s1 + $0x13c] sm:$0xf] }
 0x20a   :  { %v810_v54 = vsel %vm809_vm5, %v808_v52, %v694_v44  ;;  %v3036_v44 = vor.u32 %v3861_v35, %v3033_v37  ;;  %v3041_v52 = vld [vmem:[%s5489_s1 + $0x15c] sm:$0xf0] }
 0x20c   :  { %583 = vmatpush.bf16.msrb.mxu1 %v3036_v44 }
 0x20f   :  { %v705_v53 = vpop.xlane.xlu0 %704  ;;  %v728_v55 = vpop.xlane.xlu2 %727 }
 0x210   :  { %v812_v56 = vsel %vm811_vm6, %v810_v54, %v705_v53  ;;  %v716_v57 = vpop.xlane.xlu1 %715  ;;  %v3000_v53 = vor.u32 %v3852_v46, %v2997_v47  ;;  %v3004_v54 = vor.u32 %v3857_v50, %v3003_v48  ;;  %v4152_v46 = vmov 5  }
 0x211   :  { %v814_v58 = vsel %vm813_vm7, %v812_v56, %v716_v57  ;;  %v2961_v56 = vld [vmem:[%s5489_s1 + $0xc4] sm:$0xf0]  ;;  %v4153_v47 = vmov 10   ;;  %v4154_v48 = vmov 9   ;;  %v4156_v50 = vmov 0  }
 0x212   :  { %v816_v59 = vsel %vm815_vm8, %v814_v58, %v728_v55  ;;  %v3843_v55 = vld [vmem:[%s5489_s1 + $0xa4] sm:$0xf]  ;;  %v2967_v57 = vld [vmem:[%s5489_s1 + $0xa8] sm:$0xf]  ;;  %v3044_v58 = vor.u32 %v3862_v51, %v3041_v52  ;;  %584 = vmatpush.bf16.msrb.mxu1 %v3000_v53  ;;  %597 = vmatpush.bf16.msrb.mxu2 %v3004_v54  ;;  %v4157_v51 = vmov 13   ;;  %v4158_v52 = vmov 11  }
 0x213   :  { %v818_v63 = vsel %vm817_vm9, %v816_v59, %v736_v43  ;;  %v3077_v43 = vld [vmem:[%s5489_s1 + $0x1a4] sm:$0xf0]  ;;  %v3848_v59 = vld [vmem:[%s5489_s1 + $0xc8] sm:$0xf0]  ;;  %v4159_v53 = vmov 15   ;;  %v4160_v54 = vmov 14  }
 0x214   :  { %v3080_v49 = vor.u32 %v3871_v42, %v3077_v43 }
 0x216   :  { %608 = vmatpush.bf16.msrb.mxu3 %v3080_v49  ;;  %v4155_v49 = vmov 7  }
 0x217   :  { %v758_v60 = vpop.xlane.xlu2 %757  ;;  %v770_v61 = vpop.xlane.xlu0 %769 }
 0x218   :  { %v747_v62 = vpop.xlane.xlu1 %746 }
 0x219   :  { %v820_v0 = vsel %vm819_vm10, %v818_v63, %v747_v62  ;;  %v2964_v63 = vor.u32 %v3843_v55, %v2961_v56  ;;  %v4161_v55 = vmov 4  }
 0x21a   :  { %v822_v1 = vsel %vm821_vm11, %v820_v0, %v758_v60  ;;  %v3853_v60 = vld [vmem:[%s5489_s1 + $0xf4] sm:$0xf]  ;;  %609 = vmatpush.bf16.msrb.mxu3 %v3044_v58 }
 0x21b   :  { %v824_v3 = vsel %vm823_vm12, %v822_v1, %v770_v61  ;;  %v3005_v61 = vld [vmem:[%s5489_s1 + $0x114] sm:$0xf0]  ;;  %v2968_v1 = vor.u32 %v3848_v59, %v2967_v57  ;;  %585 = vmatpush.bf16.msrb.mxu1 %v2964_v63 }
 0x21d   :  { %598 = vmatpush.bf16.msrb.mxu2 %v2968_v1 }
 0x21f   :  { %v789_v2 = vpop.xlane.xlu2 %788  ;;  %v800_v6 = vpop.xlane.xlu0 %799 }
 0x220   :  { %v778_v4 = vpop.xlane.xlu1 %777 }
 0x221   :  { %v826_v5 = vsel %vm825_vm13, %v824_v3, %v778_v4  ;;  %v2925_v3 = vld [vmem:[%s5489_s1 + $0x7c] sm:$0xf0] }
 0x222   :  { %v828_v7 = vsel %vm827_vm14, %v826_v5, %v789_v2  ;;  %v3834_v2 = vld [vmem:[%s5489_s1 + $0x5c] sm:$0xf]  ;;  %v2931_v4 = vld [vmem:[%s5489_s1 + $0x60] sm:$0xf]  ;;  %v3008_v5 = vor.u32 %v3853_v60, %v3005_v61 }
 0x223   :  { %v4597_v8 = vsel %vm829_vm15, %v828_v7, %v800_v6  ;;  %v3839_v6 = vld [vmem:[%s5489_s1 + $0x80] sm:$0xf0]  ;;  %v3844_v7 = vld [vmem:[%s5489_s1 + $0xac] sm:$0xf]  ;;  %v2928_v10 = vor.u32 %v3834_v2, %v2925_v3 }
 0x224   :  { %v832_v9 = vsel %vm831_vm1, %v4597_v8, -inf  ;;  %v2932_v11 = vor.u32 %v3839_v6, %v2931_v4  ;;  %610 = vmatpush.bf16.msrb.mxu3 %v3008_v5 }
 0x225   :  { %833 = vmax.xlane.f32.xlu1 %v832_v9  ;;  %586 = vmatpush.bf16.msrb.mxu1 %v2928_v10 }
 0x226   :  { %599 = vmatpush.bf16.msrb.mxu2 %v2932_v11 }
 0x229   :  { %587 = vmatpush.bf16.msrb.mxu1 %v2892_v20 }
 0x22a   :  { %600 = vmatpush.bf16.msrb.mxu2 %v2896_v21 }
 0x22c   :  { %588 = vmatmul.bf16.vlgmr.msrb.gmra.mxu1 %v4422_v33 }
 0x22d   :  { %601 = vmatmul.bf16.vlgmr.msrb.gmra.mxu2 %v4422_v33 }
 0x298   :  { %v834_v62 = vpop.xlane.xlu1 %833 }
 0x299   :  { %v835_v0 = vsub.f32 %v4597_v8, %v834_v62  ;;  %v2969_v8 = vld [vmem:[%s5489_s1 + $0xcc] sm:$0xf0]  ;;  %v4162_v62 = vmov 8  }
 0x29a   :  { %v2972_v14 = vor.u32 %v3844_v7, %v2969_v8  ;;  %v134_v7 = vperm.slane %v4523_v18, 5  ;;  %v4163_v8 = vmov 12  }
 0x29b   :  { %v836_v9 = vmul.f32 1.442695, %v835_v0  ;;  %v133_v0 = vperm.slane %v4523_v18, 4 }
 0x29c   :  { %611 = vmatpush.bf16.msrb.mxu3 %v2972_v14  ;;  %v135_v14 = vperm.slane %v4523_v18, 6 }
 0x29d   :  { %4103 = vpow2.f32 %v836_v9  ;;  %v577_v1 = vadd.f32 %v4541_v36, %v133_v0 }
 0x2a0   :  { %612 = vmatpush.bf16.msrb.mxu3 %v2936_v22 }
 0x2a3   :  { %v4104_v23 = vpop.eup %4103 }
 0x2a4   :  { %v838_v24 = vsel %vm831_vm1, %v4104_v23, 0.0  ;;  %613 = vmatpush.bf16.msrb.mxu3 %v2900_v27 }
 0x2a5   :  { %839 = vadd.xlane.f32.xlu2 %v838_v24 }
 0x2a7   :  { %614 = vmatmul.bf16.vlgmr.msrb.gmra.mxu3 %v4422_v33 }
 0x2a9   :  { %v589_v56 = vpop.f32.mrf.mxu1 }
 0x2aa   :  { %v590_v9 = vadd.f32 %v589_v56, %v134_v7  ;;  %v4097_v7 = vld [vmem:[%s5497_s9] ss:$0 sm:$0xff] }
 0x2b0   :  { %v602_v58 = vpop.f32.mrf.mxu2 }
 0x2b1   :  { %v591_v57 = vpop.f32.mrf.mxu1  ;;  %v603_v19 = vadd.f32 %v602_v58, %v135_v14 }
 0x2b8   :  { %v604_v59 = vpop.f32.mrf.mxu2 }
 0x318   :  { %v840_v31 = vpop.xlane.xlu2 %839 }
 0x319   :  { %4105 = vrcp.f32 %v840_v31  ;;  %v852_v37 = vand.u32 2147483648, %v840_v31  ;;  %v850_v39 = vand.u32 2147483647, %v840_v31  ;;  %vm846_vm3 = vweird.f32 %v840_v31 }
 0x31b   :  { %v853_v42 = vor.u32 1.1754944e-38, %v852_v37  ;;  %vm851_vm5 = vcmp.eq.f32.partialorder %v850_v39, 8.507059e+37  ;;  %v3896_v39 = vld [vmem:[%s5491_s3 + $0x8] sm:$0xff] }
 0x31c   :  { %1028 = vmatpush.bf16.msra.mxu1 %v3896_v39  ;;  %v3897_v39 = vld [vmem:[%s5492_s4 + $0x4] sm:$0xf] }
 0x31f   :  { %v4106_v32 = vpop.eup %4105 }
 0x320   :  { %v842_v34 = vmul.f32 %v4106_v32, %v840_v31  ;;  %vm847_vm2 = vweird.f32 %v4106_v32 }
 0x321   :  { %vm848_vm4 = vmor %vm846_vm3, %vm847_vm2 }
 0x322   :  { %v843_v35 = vsub.f32 1.0, %v842_v34 }
 0x324   :  { %v844_v38 = vmul.f32 %v4106_v32, %v843_v35 }
 0x326   :  { %v845_v41 = vadd.f32 %v4106_v32, %v844_v38 }
 0x328   :  { %v849_v33 = vsel %vm848_vm4, %v4106_v32, %v845_v41 }
 0x329   :  { %v854_v43 = vsel %vm851_vm5, %v853_v42, %v849_v33 }
 0x32a   :  { %v4750_v44 = vmul.f32 %v4104_v23, %v854_v43  ;;  %v615_v60 = vpop.f32.mrf.mxu3 }
 0x32b   :  { %v616_v20 = vadd.f32 %v615_v60, %v136_v15 }
 0x32c   :  { %884 = vperm.xlu2 %4080, %v4750_v44   ;;  %874 = vperm.xlu1 %4079, %v4750_v44  }
 0x32d   :  { %864 = vperm.xlu0 %4078, %v4750_v44  }
 0x332   :  { %v617_v61 = vpop.f32.mrf.mxu3 }
 0x334   :  { %4082 = vset.pattern.permute.xlu2 %v4151_v45  ;;  %4081 = vset.pattern.permute.xlu1 %v4152_v46 }
 0x335   :  { %4085 = vset.pattern.permute.xlu0 %v4153_v47  ;;  %910 = vperm.xlu2 %4082, %v4750_v44   ;;  %v3895_v47 = vld [vmem:[%s5491_s3] sm:$0xff] }
 0x336   :  { %900 = vperm.xlu1 %4081, %v4750_v44   ;;  %946 = vperm.xlu0 %4085, %v4750_v44  }
 0x337   :  { %1029 = vmatpush.bf16.msra.mxu1 %v3895_v47  ;;  %v3186_v47 = vld [vmem:[%s5492_s4 + $0x50] sm:$0xf0] }
 0x33d   :  { %4084 = vset.pattern.permute.xlu2 %v4154_v48 }
 0x33e   :  { %4083 = vset.pattern.permute.xlu1 %v4155_v49  ;;  %4090 = vset.pattern.permute.xlu0 %v4156_v50 }
 0x33f   :  { %936 = vperm.xlu2 %4084, %v4750_v44   ;;  %920 = vperm.xlu1 %4083, %v4750_v44  }
 0x340   :  { %858 = vperm.xlu0 %4090, %v4750_v44  }
 0x347   :  { %4087 = vset.pattern.permute.xlu2 %v4157_v51  ;;  %4086 = vset.pattern.permute.xlu1 %v4158_v52 }
 0x348   :  { %972 = vperm.xlu2 %4087, %v4750_v44   ;;  %956 = vperm.xlu1 %4086, %v4750_v44  }
 0x349   :  { %4092 = vset.pattern.permute.xlu0 %v4162_v62 }
 0x350   :  { %4089 = vset.pattern.permute.xlu2 %v4159_v53  ;;  %4088 = vset.pattern.permute.xlu1 %v4160_v54 }
 0x351   :  { %992 = vperm.xlu2 %4089, %v4750_v44   ;;  %982 = vperm.xlu1 %4088, %v4750_v44  }
 0x359   :  { %4091 = vset.pattern.permute.xlu2 %v4161_v55  ;;  %4094 = vset.pattern.permute.xlu1 %v4156_v50 }
 0x35a   :  { %894 = vperm.xlu2 %4091, %v4750_v44  }
 0x362   :  { %4093 = vset.pattern.permute.xlu2 %v4163_v8 }
 0x386   :  { %v885_v63 = vpop.permute.xlu2 %884 }
 0x387   :  { %v887_v10 = vmul.f32 %v885_v63, %v577_v1 }
 0x38f   :  { %v911_v6 = vpop.permute.xlu2 %910 }
 0x390   :  { %v913_v13 = vmul.f32 %v911_v6, %v590_v9 }
 0x399   :  { %v937_v36 = vpop.permute.xlu2 %936 }
 0x39a   :  { %v939_v23 = vmul.f32 %v937_v36, %v603_v19  ;;  %v4164_v36 = vmov 32.0  }
 0x39b   :  { %4107 = vrcp.f32 %v4164_v36 }
 0x39e   :  { %v875_v2 = vpop.permute.xlu1 %874 }
 0x39f   :  { %v877_v3 = vmul.f32 %v875_v2, %v577_v1  ;;  %v865_v4 = vpop.permute.xlu0 %864 }
 0x3a0   :  { %v867_v5 = vmul.f32 %v865_v4, %v577_v1 }
 0x3a1   :  { %879 = vrot.lane.b32.xlu2 %v877_v3, %s4145_s25 }
 0x3a2   :  { %869 = vrot.lane.b32.xlu1 %v867_v5, %s4147_s27  ;;  %v973_v21 = vpop.permute.xlu2 %972 }
 0x3a3   :  { %v975_v24 = vmul.f32 %v973_v21, %v616_v20 }
 0x3a8   :  { %v901_v11 = vpop.permute.xlu1 %900  ;;  %v947_v22 = vpop.permute.xlu0 %946 }
 0x3a9   :  { %v903_v12 = vmul.f32 %v901_v11, %v590_v9  ;;  %v949_v25 = vmul.f32 %v947_v22, %v603_v19 }
 0x3aa   :  { %889 = vrot.lane.b32.xlu1 %v887_v10, %s4146_s26 }
 0x3ab   :  { %905 = vrot.lane.b32.xlu0 %v903_v12, %s4147_s27  ;;  %v993_v28 = vpop.permute.xlu2 %992 }
 0x3ac   :  { %v995_v30 = vmul.f32 %v993_v28, %v616_v20  ;;  %v3240_v28 = vld [vmem:[%s5492_s4 + $0x88] sm:$0xf] }
 0x3b1   :  { %v921_v16 = vpop.permute.xlu1 %920 }
 0x3b2   :  { %v923_v17 = vmul.f32 %v921_v16, %v590_v9  ;;  %915 = vrot.lane.b32.xlu1 %v913_v13, %s4145_s25  ;;  %v859_v32 = vpop.permute.xlu0 %858  ;;  %v4108_v13 = vpop.eup %4107 }
 0x3b3   :  { %930 = vperm.xlu0 %4092, %v4750_v44   ;;  %v861_v35 = vmul.f32 %v859_v32, %v577_v1  ;;  %v1040_v14 = vmul.f32 32.0, %v4108_v13  ;;  %vm1044_vm6 = vweird.f32 %v4108_v13  ;;  %v3915_v32 = vld [vmem:[%s5492_s4 + $0x94] sm:$0xf] }
 0x3b4   :  { %925 = vrot.lane.b32.xlu2 %v923_v17, %s4146_s26  ;;  %v895_v31 = vpop.permute.xlu2 %894 }
 0x3b5   :  { %v897_v33 = vmul.f32 %v895_v31, %v590_v9  ;;  %v1041_v15 = vsub.f32 1.0, %v1040_v14 }
 0x3b7   :  { %v1042_v16 = vmul.f32 %v4108_v13, %v1041_v15 }
 0x3b9   :  { %v1043_v17 = vadd.f32 %v4108_v13, %v1042_v16 }
 0x3ba   :  { %941 = vrot.lane.b32.xlu1 %v939_v23, %s4147_s27  ;;  %v957_v26 = vpop.permute.xlu1 %956 }
 0x3bb   :  { %977 = vrot.lane.b32.xlu0 %v975_v24, %s4147_s27  ;;  %v959_v18 = vmul.f32 %v957_v26, %v603_v19  ;;  %v3232_v24 = vld [vmem:[%s5492_s4 + $0x80] sm:$0xf]  ;;  %v3913_v26 = vld [vmem:[%s5492_s4 + $0x84] sm:$0xf] }
 0x3bc   :  { %951 = vrot.lane.b32.xlu2 %v949_v25, %s4145_s25  ;;  %4095 = vset.pattern.permute.xlu0 %v4156_v50  ;;  %v3921_v25 = vld [vmem:[%s5492_s4 + $0xbc] sm:$0xf0] }
 0x3c2   :  { %961 = vrot.lane.b32.xlu1 %v959_v18, %s4146_s26  ;;  %v3233_v18 = vor.u32 %v3921_v25, %v3232_v24  ;;  %v3916_v24 = vld [vmem:[%s5492_s4 + $0x9c] sm:$0xf] }
 0x3c3   :  { %v983_v27 = vpop.permute.xlu1 %982  ;;  %v3258_v25 = vld [vmem:[%s5492_s4 + $0xd8] sm:$0xf0] }
 0x3c4   :  { %966 = vperm.xlu2 %4093, %v4750_v44   ;;  %v985_v29 = vmul.f32 %v983_v27, %v616_v20  ;;  %v3234_v27 = vld [vmem:[%s5492_s4 + $0xc0] sm:$0xf0]  ;;  %1307 = vmatpush.bf16.msra.mxu2 %v3233_v18  ;;  %v3925_v18 = vld [vmem:[%s5492_s4 + $0xdc] sm:$0xf0] }
 0x3ca   :  { %987 = vrot.lane.b32.xlu1 %v985_v29, %s4145_s25  ;;  %v3922_v29 = vld [vmem:[%s5492_s4 + $0xc4] sm:$0xf0] }
 0x3cb   :  { %v3241_v31 = vor.u32 %v3922_v29, %v3240_v28  ;;  %v3926_v28 = vld [vmem:[%s5492_s4 + $0xe4] sm:$0xf0]  ;;  %v3919_v29 = vld [vmem:[%s5492_s4 + $0xb4] sm:$0xf] }
 0x3cc   :  { %997 = vrot.lane.b32.xlu2 %v995_v30, %s4146_s26  ;;  %v3237_v30 = vor.u32 %v3913_v26, %v3234_v27  ;;  %v3264_v26 = vld [vmem:[%s5492_s4 + $0xa0] sm:$0xf] }
 0x3cd   :  { %1333 = vmatpush.bf16.msrb.mxu1 %v3241_v31 }
 0x3ce   :  { %1320 = vmatpush.bf16.msra.mxu3 %v3237_v30  ;;  %v3282_v30 = vld [vmem:[%s5492_s4 + $0xf0] sm:$0xf0] }
 0x3fb   :  { %v880_v37 = vpop.permute.xlu2 %879 }
 0x40e   :  { %v926_v45 = vpop.permute.xlu2 %925 }
 0x414   :  { %v870_v34 = vpop.permute.xlu1 %869 }
 0x415   :  { %v872_v38 = vadd.f32 %v870_v34, %v861_v35  ;;  %v3250_v34 = vld [vmem:[%s5492_s4 + $0xd0] sm:$0xf0] }
 0x416   :  { %v952_v52 = vpop.permute.xlu2 %951  ;;  %v3253_v35 = vor.u32 %v3915_v32, %v3250_v34  ;;  %v3261_v32 = vor.u32 %v3916_v24, %v3258_v25  ;;  %v3265_v34 = vor.u32 %v3925_v18, %v3264_v26  ;;  %v3948_v24 = vld [vmem:[%s5494_s6 + $0x98] sm:$0xff]  ;;  %v3959_v18 = vld [vmem:[%s5494_s6 + $0xf0] sm:$0xff] }
 0x417   :  { %v882_v41 = vadd.f32 %v880_v37, %v872_v38  ;;  %v3168_v37 = vld [vmem:[%s5492_s4] sm:$0xf]  ;;  %v3932_v25 = vld [vmem:[%s5494_s6 + $0x18] sm:$0xff] }
 0x418   :  { %v3905_v38 = vld [vmem:[%s5492_s4 + $0x3c] sm:$0xf0]  ;;  %1372 = vmatpush.bf16.msrb.mxu0 %v3253_v35  ;;  %v3900_v35 = vld [vmem:[%s5492_s4 + $0x1c] sm:$0xf] }
 0x419   :  { %v3940_v26 = vld [vmem:[%s5494_s6 + $0x58] sm:$0xff] }
 0x41c   :  { %v890_v42 = vpop.permute.xlu1 %889 }
 0x41d   :  { %v892_v43 = vadd.f32 %v890_v42, %v882_v41  ;;  %v906_v44 = vpop.permute.xlu0 %905  ;;  %v3169_v41 = vor.u32 %v3905_v38, %v3168_v37  ;;  %v3170_v42 = vld [vmem:[%s5492_s4 + $0x40] sm:$0xf0]  ;;  %v3194_v37 = vld [vmem:[%s5492_s4 + $0x58] sm:$0xf0] }
 0x41e   :  { %v967_v58 = vpop.permute.xlu2 %966 }
 0x41f   :  { %v898_v46 = vadd.f32 %v897_v33, %v892_v43  ;;  %v969_v61 = vmul.f32 %v967_v58, %v616_v20  ;;  %v3176_v33 = vld [vmem:[%s5492_s4 + $0x8] sm:$0xf]  ;;  %1308 = vmatpush.bf16.msra.mxu2 %v3169_v41  ;;  %v3200_v41 = vld [vmem:[%s5492_s4 + $0x20] sm:$0xf] }
 0x420   :  { %v3906_v43 = vld [vmem:[%s5492_s4 + $0x44] sm:$0xf0] }
 0x421   :  { %v908_v48 = vadd.f32 %v906_v44, %v898_v46  ;;  %v3173_v44 = vor.u32 %v3897_v39, %v3170_v42  ;;  %v3899_v46 = vld [vmem:[%s5492_s4 + $0x14] sm:$0xf]  ;;  %v3285_v39 = vor.u32 %v3919_v29, %v3282_v30  ;;  %v3909_v42 = vld [vmem:[%s5492_s4 + $0x5c] sm:$0xf0]  ;;  %v3958_v30 = vld [vmem:[%s5494_s6 + $0xe8] sm:$0xff] }
 0x422   :  { %v3939_v29 = vld [vmem:[%s5494_s6 + $0x50] sm:$0xff] }
 0x423   :  { %1321 = vmatpush.bf16.msra.mxu3 %v3173_v44  ;;  %v3903_v44 = vld [vmem:[%s5492_s4 + $0x34] sm:$0xf] }
 0x424   :  { %v916_v49 = vpop.permute.xlu1 %915 }
 0x425   :  { %v918_v50 = vadd.f32 %v916_v49, %v908_v48  ;;  %v931_v51 = vpop.permute.xlu0 %930  ;;  %v3189_v48 = vor.u32 %v3899_v46, %v3186_v47  ;;  %v3197_v46 = vor.u32 %v3900_v35, %v3194_v37  ;;  %v3201_v47 = vor.u32 %v3909_v42, %v3200_v41  ;;  %v3938_v35 = vld [vmem:[%s5494_s6 + $0x48] sm:$0xff]  ;;  %v3957_v37 = vld [vmem:[%s5494_s6 + $0xe0] sm:$0xff] }
 0x426   :  { %v933_v54 = vmul.f32 %v931_v51, %v603_v19  ;;  %v998_v4 = vpop.permute.xlu2 %997  ;;  %v4800_v19 = vsel %vm1044_vm6, %v4108_v13, %v1043_v17  ;;  %v3242_v51 = vld [vmem:[%s5492_s4 + $0xc8] sm:$0xf0]  ;;  %v4098_v17 = vld [vmem:[%s5497_s9 + $0x1] ss:$0 sm:$0xff] }
 0x427   :  { %v928_v53 = vadd.f32 %v926_v45, %v918_v50  ;;  %v3177_v45 = vor.u32 %v3906_v43, %v3176_v33  ;;  %1373 = vmatpush.bf16.msrb.mxu0 %v3189_v48  ;;  %v3914_v50 = vld [vmem:[%s5492_s4 + $0x8c] sm:$0xf]  ;;  %v3208_v33 = vld [vmem:[%s5492_s4 + $0x28] sm:$0xf]  ;;  %v3929_v41 = vld [vmem:[%s5494_s6] sm:$0xff] }
 0x428   :  { %v3910_v43 = vld [vmem:[%s5492_s4 + $0x64] sm:$0xf0]  ;;  %v3937_v42 = vld [vmem:[%s5494_s6 + $0x40] sm:$0xff] }
 0x429   :  { %v934_v56 = vadd.f32 %v933_v54, %v928_v53  ;;  %1334 = vmatpush.bf16.msrb.mxu1 %v3177_v45  ;;  %v3245_v54 = vor.u32 %v3914_v50, %v3242_v51  ;;  %v3218_v45 = vld [vmem:[%s5492_s4 + $0x70] sm:$0xf0]  ;;  %v3209_v48 = vor.u32 %v3910_v43, %v3208_v33  ;;  %v3918_v50 = vld [vmem:[%s5492_s4 + $0xac] sm:$0xf]  ;;  %v3968_v33 = vld [vmem:[%s5494_s6 + $0x138] sm:$0xff] }
 0x42a   :  { %v3274_v51 = vld [vmem:[%s5492_s4 + $0xe8] sm:$0xf0]  ;;  %v3976_v43 = vld [vmem:[%s5494_s6 + $0x178] sm:$0xff] }
 0x42b   :  { %1346 = vmatpush.bf16.msrb.mxu2 %v3245_v54  ;;  %v3288_v54 = vld [vmem:[%s5492_s4 + $0xb8] sm:$0xf] }
 0x42c   :  { %v942_v55 = vpop.permute.xlu1 %941 }
 0x42d   :  { %v944_v57 = vadd.f32 %v942_v55, %v934_v56  ;;  %v978_v0 = vpop.permute.xlu0 %977  ;;  %v3923_v55 = vld [vmem:[%s5492_s4 + $0xcc] sm:$0xf0]  ;;  %v3256_v56 = vld [vmem:[%s5492_s4 + $0x98] sm:$0xf] }
 0x42f   :  { %v954_v59 = vadd.f32 %v952_v52, %v944_v57  ;;  %v3248_v52 = vld [vmem:[%s5492_s4 + $0x90] sm:$0xf]  ;;  %v3924_v57 = vld [vmem:[%s5492_s4 + $0xd4] sm:$0xf0] }
 0x430   :  { %v3249_v58 = vor.u32 %v3923_v55, %v3248_v52  ;;  %v3280_v52 = vld [vmem:[%s5492_s4 + $0xb0] sm:$0xf]  ;;  %v3928_v55 = vld [vmem:[%s5492_s4 + $0xf4] sm:$0xf0] }
 0x432   :  { %1359 = vmatpush.bf16.msrb.mxu3 %v3249_v58  ;;  %v3902_v58 = vld [vmem:[%s5492_s4 + $0x2c] sm:$0xf] }
 0x434   :  { %v962_v60 = vpop.permute.xlu1 %961 }
 0x435   :  { %v964_v62 = vadd.f32 %v962_v60, %v954_v59  ;;  %v3257_v59 = vor.u32 %v3924_v57, %v3256_v56  ;;  %v3917_v60 = vld [vmem:[%s5492_s4 + $0xa4] sm:$0xf]  ;;  %v3277_v56 = vor.u32 %v3918_v50, %v3274_v51  ;;  %v3974_v50 = vld [vmem:[%s5494_s6 + $0x168] sm:$0xff] }
 0x436   :  { %v3954_v51 = vld [vmem:[%s5494_s6 + $0xc8] sm:$0xff] }
 0x437   :  { %v970_v63 = vadd.f32 %v969_v61, %v964_v62  ;;  %v3266_v61 = vld [vmem:[%s5492_s4 + $0xe0] sm:$0xf0]  ;;  %v3898_v62 = vld [vmem:[%s5492_s4 + $0xc] sm:$0xf] }
 0x439   :  { %v980_v1 = vadd.f32 %v978_v0, %v970_v63  ;;  %v3269_v0 = vor.u32 %v3917_v60, %v3266_v61  ;;  %v3210_v60 = vld [vmem:[%s5492_s4 + $0x68] sm:$0xf0]  ;;  %v3216_v61 = vld [vmem:[%s5492_s4 + $0x30] sm:$0xf] }
 0x43b   :  { %1424 = vmatpush.bf16.msra.mxu0 %v3269_v0  ;;  %v3912_v0 = vld [vmem:[%s5492_s4 + $0x74] sm:$0xf0] }
 0x43c   :  { %v988_v2 = vpop.permute.xlu1 %987 }
 0x43d   :  { %v990_v3 = vadd.f32 %v988_v2, %v980_v1  ;;  %v3178_v1 = vld [vmem:[%s5492_s4 + $0x48] sm:$0xf0]  ;;  %v3184_v2 = vld [vmem:[%s5492_s4 + $0x10] sm:$0xf] }
 0x43f   :  { %v1000_v5 = vadd.f32 %v998_v4, %v990_v3  ;;  %v3181_v3 = vor.u32 %v3898_v62, %v3178_v1  ;;  %v3907_v4 = vld [vmem:[%s5492_s4 + $0x4c] sm:$0xf0]  ;;  %v3213_v1 = vor.u32 %v3902_v58, %v3210_v60  ;;  %v3964_v58 = vld [vmem:[%s5494_s6 + $0x118] sm:$0xff] }
 0x440   :  { %v3911_v62 = vld [vmem:[%s5492_s4 + $0x6c] sm:$0xf0]  ;;  %v3992_v60 = vld [vmem:[%s5494_s6 + $0x1f8] sm:$0xff] }
 0x441   :  { %v1001_v6 = vpack.c.bf16 %v1000_v5, %v1000_v5  ;;  %v3192_v5 = vld [vmem:[%s5492_s4 + $0x18] sm:$0xf]  ;;  %1347 = vmatpush.bf16.msrb.mxu2 %v3181_v3 }
 0x443   :  { %3165 = vmatmul.msk.bf16.vlgmr.msra.gmra.mxu1 %vm641_vm0, %v1001_v6  ;;  %v3908_v6 = vld [vmem:[%s5492_s4 + $0x54] sm:$0xf0] }
 0x444   :  { %1385 = vmatpush.bf16.msra.mxu1 %v3257_v59  ;;  %v3289_v59 = vor.u32 %v3928_v55, %v3288_v54  ;;  %v3973_v54 = vld [vmem:[%s5494_s6 + $0x160] sm:$0xff] }
 0x445   :  { %v3953_v55 = vld [vmem:[%s5494_s6 + $0xc0] sm:$0xff] }
 0x4c0   :  { %v1031_v8 = vpop.f32.mrf.mxu1 }
 0x4c1   :  { %v1032_v9 = vadd.f32 %v4097_v7, %v1031_v8  ;;  %v3185_v7 = vor.u32 %v3907_v4, %v3184_v2  ;;  %v3193_v8 = vor.u32 %v3908_v6, %v3192_v5  ;;  %v3217_v2 = vor.u32 %v3911_v62, %v3216_v61  ;;  %v3920_v4 = vld [vmem:[%s5492_s4 + $0xbc] sm:$0xf]  ;;  %v3978_v61 = vld [vmem:[%s5494_s6 + $0x188] sm:$0xff]  ;;  %v3963_v62 = vld [vmem:[%s5494_s6 + $0x110] sm:$0xff] }
 0x4c2   :  { %v3290_v5 = vld [vmem:[%s5492_s4 + $0xf8] sm:$0xf0] }
 0x4c3   :  { %v1035_v10 = vadd.f32 %v1032_v9, %v4546_v40  ;;  %v3901_v9 = vld [vmem:[%s5492_s4 + $0x24] sm:$0xf]  ;;  %1360 = vmatpush.bf16.msrb.mxu3 %v3185_v7  ;;  %1386 = vmatpush.bf16.msra.mxu1 %v3193_v8  ;;  %v3293_v6 = vor.u32 %v3920_v4, %v3290_v5  ;;  %v3904_v7 = vld [vmem:[%s5492_s4 + $0x3c] sm:$0xf]  ;;  %v3990_v4 = vld [vmem:[%s5494_s6 + $0x1e8] sm:$0xff] }
 0x4c4   :  { %v3226_v8 = vld [vmem:[%s5492_s4 + $0x78] sm:$0xf0]  ;;  %v3961_v5 = vld [vmem:[%s5494_s6 + $0x100] sm:$0xff] }
 0x4c5   :  { %v1036_v11 = vsel %vm641_vm0, %v1035_v10, 0.0 }
 0x4c6   :  { %1037 = vadd.xlane.f32.xlu0 %v1036_v11 }
 0x4c8   :  { %v1033_v12 = vpop.f32.mrf.mxu1 }
 0x539   :  { %v1038_v20 = vpop.xlane.xlu0 %1037 }
 0x53a   :  { %v1046_v21 = vmul.f32 %v4800_v19, %v1038_v20 }
 0x53c   :  { %v4803_v22 = vsub.f32 %v1035_v10, %v1046_v21  ;;  %v3202_v10 = vld [vmem:[%s5492_s4 + $0x60] sm:$0xf0]  ;;  %v4099_v21 = vld [vmem:[%s5497_s9 + $0x2] ss:$0 sm:$0xff] }
 0x53d   :  { %v3205_v11 = vor.u32 %v3901_v9, %v3202_v10  ;;  %v3952_v9 = vld [vmem:[%s5494_s6 + $0xb8] sm:$0xff] }
 0x53e   :  { %v1048_v40 = vmul.f32 %v4803_v22, %v4803_v22  ;;  %v3936_v10 = vld [vmem:[%s5494_s6 + $0x38] sm:$0xff] }
 0x53f   :  { %1425 = vmatpush.bf16.msra.mxu0 %v3205_v11  ;;  %v3944_v11 = vld [vmem:[%s5494_s6 + $0x78] sm:$0xff] }
 0x540   :  { %v1049_v23 = vsel %vm641_vm0, %v1048_v40, 0.0 }
 0x541   :  { %1050 = vadd.xlane.f32.xlu1 %v1049_v23 }
 0x5b4   :  { %v1051_v49 = vpop.xlane.xlu1 %1050 }
 0x5b5   :  { %v1052_v53 = vmul.f32 %v1051_v49, %v4800_v19  ;;  %v3221_v49 = vor.u32 %v3903_v44, %v3218_v45  ;;  %v3956_v44 = vld [vmem:[%s5494_s6 + $0xd8] sm:$0xff]  ;;  %v3983_v45 = vld [vmem:[%s5494_s6 + $0x1b0] sm:$0xff] }
 0x5b7   :  { %v1053_v63 = vadd.f32 1e-05, %v1052_v53  ;;  %v3927_v53 = vld [vmem:[%s5492_s4 + $0xec] sm:$0xf0] }
 0x5b8   :  { %v3281_v57 = vor.u32 %v3927_v53, %v3280_v52  ;;  %v3981_v52 = vld [vmem:[%s5494_s6 + $0x1a0] sm:$0xff] }
 0x5b9   :  { %4109 = vrsqrt.f32 %v1053_v63  ;;  %vm1060_vm9 = vweird.f32 %v1053_v63  ;;  %v3965_v53 = vld [vmem:[%s5494_s6 + $0x120] sm:$0xff] }
 0x5bf   :  { %v4110_v12 = vpop.eup %4109 }
 0x5c0   :  { %v1055_v36 = vmul.f32 %v4110_v12, %v1053_v63  ;;  %vm1061_vm7 = vweird.f32 %v4110_v12  ;;  %v3224_v63 = vld [vmem:[%s5492_s4 + $0x38] sm:$0xf] }
 0x5c1   :  { %vm1062_vm10 = vmor %vm1060_vm9, %vm1061_vm7  ;;  %v3225_v3 = vor.u32 %v3912_v0, %v3224_v63  ;;  %v3971_v63 = vld [vmem:[%s5494_s6 + $0x150] sm:$0xff] }
 0x5c2   :  { %v1056_v13 = vmul.f32 %v4110_v12, %v1055_v36  ;;  %v3951_v36 = vld [vmem:[%s5494_s6 + $0xb0] sm:$0xff] }
 0x5c3   :  { %v3991_v0 = vld [vmem:[%s5494_s6 + $0x1f0] sm:$0xff] }
 0x5c4   :  { %v1057_v14 = vmul.f32 0.5, %v1056_v13  ;;  %v3935_v13 = vld [vmem:[%s5494_s6 + $0x30] sm:$0xff] }
 0x5c6   :  { %v1058_v15 = vsub.f32 1.5, %v1057_v14  ;;  %v3943_v14 = vld [vmem:[%s5494_s6 + $0x70] sm:$0xff] }
 0x5c8   :  { %v1059_v16 = vmul.f32 %v4110_v12, %v1058_v15  ;;  %v3950_v15 = vld [vmem:[%s5494_s6 + $0xa8] sm:$0xff] }
 0x5ca   :  { %v1063_v20 = vsel %vm1062_vm10, %v4110_v12, %v1059_v16  ;;  %v3229_v12 = vor.u32 %v3904_v7, %v3226_v8  ;;  %v3934_v16 = vld [vmem:[%s5494_s6 + $0x28] sm:$0xff]  ;;  %v3989_v7 = vld [vmem:[%s5494_s6 + $0x1e0] sm:$0xff]  ;;  %v3988_v8 = vld [vmem:[%s5494_s6 + $0x1d8] sm:$0xff] }
 0x5cb   :  { %v1064_v40 = vmul.f32 %v1063_v20, %v4803_v22  ;;  %v3272_v22 = vld [vmem:[%s5492_s4 + $0xa8] sm:$0xf]  ;;  %v3949_v20 = vld [vmem:[%s5494_s6 + $0xa0] sm:$0xff] }
 0x5cc   :  { %v3273_v38 = vor.u32 %v3926_v28, %v3272_v22  ;;  %v3947_v22 = vld [vmem:[%s5494_s6 + $0x90] sm:$0xff] }
 0x5cd   :  { %v1066_v23 = vmul.f32 %v4098_v17, %v1064_v40  ;;  %v3942_v17 = vld [vmem:[%s5494_s6 + $0x68] sm:$0xff]  ;;  %v3941_v40 = vld [vmem:[%s5494_s6 + $0x60] sm:$0xff]  ;;  %v3931_v28 = vld [vmem:[%s5494_s6 + $0x10] sm:$0xff] }
 0x5cf   :  { %v4927_v27 = vadd.f32 %v4099_v21, %v1066_v23  ;;  %v3933_v21 = vld [vmem:[%s5494_s6 + $0x20] sm:$0xff]  ;;  %v3960_v23 = vld [vmem:[%s5494_s6 + $0xf8] sm:$0xff] }
 0x5d1   :  { %v4940_v31 = vpack.c.bf16 %v4927_v27, %v4927_v27 }
 0x5d3   :  { %3294 = vmatmul.msk.bf16.vlgmr.msra.gmra.mxu2 %vm641_vm0, %v4940_v31  ;;  %3295 = vmatmul.msk.bf16.vlgmr.msra.gmra.mxu3 %vm641_vm0, %v4940_v31 }
 0x5d4   :  { %3296 = vmatmul.msk.bf16.vlgmr.msrb.gmra.mxu1 %vm641_vm0, %v4940_v31  ;;  %3299 = vmatmul.msk.bf16.vlgmr.msrb.gmra.mxu0 %vm641_vm0, %v4940_v31 }
 0x5d5   :  { %1398 = vmatpush.bf16.msra.mxu2 %v3261_v32  ;;  %1411 = vmatpush.bf16.msra.mxu3 %v3265_v34  ;;  %v3946_v32 = vld [vmem:[%s5494_s6 + $0x88] sm:$0xff] }
 0x5d6   :  { %1437 = vmatpush.bf16.msrb.mxu1 %v3273_v38  ;;  %1476 = vmatpush.bf16.msrb.mxu0 %v3285_v39  ;;  %v3930_v34 = vld [vmem:[%s5494_s6 + $0x8] sm:$0xff]  ;;  %v3945_v38 = vld [vmem:[%s5494_s6 + $0x80] sm:$0xff]  ;;  %v3984_v39 = vld [vmem:[%s5494_s6 + $0x1b8] sm:$0xff] }
 0x5d9   :  { %1399 = vmatpush.bf16.msra.mxu2 %v3197_v46  ;;  %1412 = vmatpush.bf16.msra.mxu3 %v3201_v47  ;;  %v3967_v46 = vld [vmem:[%s5494_s6 + $0x130] sm:$0xff] }
 0x5da   :  { %1438 = vmatpush.bf16.msrb.mxu1 %v3209_v48  ;;  %1477 = vmatpush.bf16.msrb.mxu0 %v3221_v49  ;;  %v3975_v47 = vld [vmem:[%s5494_s6 + $0x170] sm:$0xff]  ;;  %v3966_v49 = vld [vmem:[%s5494_s6 + $0x128] sm:$0xff] }
 0x5db   :  { %v3955_v48 = vld [vmem:[%s5494_s6 + $0xd0] sm:$0xff] }
 0x5e3   :  { %3297 = vmatmul.msk.bf16.vlgmr.msrb.gmra.mxu2 %vm641_vm0, %v4940_v31  ;;  %3298 = vmatmul.msk.bf16.vlgmr.msrb.gmra.mxu3 %vm641_vm0, %v4940_v31 }
 0x5e4   :  { %3300 = vmatmul.msk.bf16.vlgmr.msra.gmra.mxu1 %vm641_vm0, %v4940_v31  ;;  %3303 = vmatmul.msk.bf16.vlgmr.msra.gmra.mxu0 %vm641_vm0, %v4940_v31 }
 0x5e5   :  { %1450 = vmatpush.bf16.msrb.mxu2 %v3277_v56  ;;  %1463 = vmatpush.bf16.msrb.mxu3 %v3281_v57  ;;  %v3980_v56 = vld [vmem:[%s5494_s6 + $0x198] sm:$0xff]  ;;  %v3979_v57 = vld [vmem:[%s5494_s6 + $0x190] sm:$0xff] }
 0x5e6   :  { %1489 = vmatpush.bf16.msra.mxu1 %v3289_v59  ;;  %2579 = vmatpush.bf16.msra.mxu0 %v3944_v11  ;;  %v3972_v59 = vld [vmem:[%s5494_s6 + $0x158] sm:$0xff]  ;;  %v5238_v11 = vld [vmem:[%s5493_s5] sm:$0xff] }
 0x5e9   :  { %1451 = vmatpush.bf16.msrb.mxu2 %v3213_v1  ;;  %1464 = vmatpush.bf16.msrb.mxu3 %v3217_v2  ;;  %v3977_v1 = vld [vmem:[%s5494_s6 + $0x180] sm:$0xff]  ;;  %v3962_v2 = vld [vmem:[%s5494_s6 + $0x108] sm:$0xff] }
 0x5ea   :  { %1490 = vmatpush.bf16.msra.mxu1 %v3225_v3  ;;  %2580 = vmatpush.bf16.msra.mxu0 %v3943_v14  ;;  %v3970_v3 = vld [vmem:[%s5494_s6 + $0x148] sm:$0xff] }
 0x5ee   :  { %2581 = vmatpush.bf16.msra.mxu0 %v3942_v17  ;;  %v1107_v17 = vperm.slane %v5238_v11, 1 }
 0x5f2   :  { %2582 = vmatpush.bf16.msra.mxu0 %v3941_v40 }
 0x5f3   :  { %3301 = vmatmul.msk.bf16.vlgmr.msra.gmra.mxu2 %vm641_vm0, %v4940_v31  ;;  %3302 = vmatmul.msk.bf16.vlgmr.msra.gmra.mxu3 %vm641_vm0, %v4940_v31 }
 0x5f4   :  { %3304 = vmatmul.msk.bf16.vlgmr.msrb.gmra.mxu1 %vm641_vm0, %v4940_v31  ;;  %3307 = vmatmul.msk.bf16.vlgmr.msrb.gmra.mxu0 %vm641_vm0, %v4940_v31 }
 0x5f5   :  { %1502 = vmatpush.bf16.msra.mxu2 %v3293_v6  ;;  %2592 = vmatpush.bf16.msrb.mxu1 %v3952_v9  ;;  %v3969_v6 = vld [vmem:[%s5494_s6 + $0x140] sm:$0xff]  ;;  %v3987_v9 = vld [vmem:[%s5494_s6 + $0x1d0] sm:$0xff] }
 0x5f6   :  { %2566 = vmatpush.bf16.msra.mxu3 %v3936_v10  ;;  %2583 = vmatpush.bf16.msra.mxu0 %v3940_v26  ;;  %v3986_v10 = vld [vmem:[%s5494_s6 + $0x1c8] sm:$0xff] }
 0x5f9   :  { %1503 = vmatpush.bf16.msra.mxu2 %v3229_v12  ;;  %2593 = vmatpush.bf16.msrb.mxu1 %v3951_v36  ;;  %v3985_v12 = vld [vmem:[%s5494_s6 + $0x1c0] sm:$0xff]  ;;  %v1108_v36 = vperm.slane %v5238_v11, 2 }
 0x5fa   :  { %2567 = vmatpush.bf16.msra.mxu3 %v3935_v13  ;;  %2584 = vmatpush.bf16.msra.mxu0 %v3939_v29 }
 0x5fd   :  { %2594 = vmatpush.bf16.msrb.mxu1 %v3950_v15 }
 0x5fe   :  { %2568 = vmatpush.bf16.msra.mxu3 %v3934_v16  ;;  %2585 = vmatpush.bf16.msra.mxu0 %v3938_v35  ;;  %v1106_v16 = vperm.slane %v5238_v11, 0 }
 0x601   :  { %2595 = vmatpush.bf16.msrb.mxu1 %v3949_v20 }
 0x602   :  { %2569 = vmatpush.bf16.msra.mxu3 %v3933_v21  ;;  %2586 = vmatpush.bf16.msra.mxu0 %v3937_v42  ;;  %v4016_v21 = vld [vmem:[%s5494_s6 + $0x2b8] sm:$0xff]  ;;  %v1112_v42 = vperm.slane %v5238_v11, 6 }
 0x603   :  { %3305 = vmatmul.msk.bf16.vlgmr.msrb.gmra.mxu2 %vm641_vm0, %v4940_v31  ;;  %3306 = vmatmul.msk.bf16.vlgmr.msrb.gmra.mxu3 %vm641_vm0, %v4940_v31 }
 0x604   :  { %3308 = vmatmul.msk.bf16.vlgmr.msra.gmra.mxu1 %vm641_vm0, %v4940_v31  ;;  %2605 = vmatpush.bf16.msrb.mxu2 %v3960_v23 }
 0x605   :  { %2596 = vmatpush.bf16.msrb.mxu1 %v3948_v24 }
 0x606   :  { %2570 = vmatpush.bf16.msra.mxu3 %v3932_v25  ;;  %2631 = vmatpush.bf16.msrb.mxu0 %v3976_v43  ;;  %v4007_v43 = vld [vmem:[%s5494_s6 + $0x270] sm:$0xff] }
 0x608   :  { %2606 = vmatpush.bf16.msrb.mxu2 %v3959_v18 }
 0x609   :  { %2597 = vmatpush.bf16.msrb.mxu1 %v3947_v22 }
 0x60a   :  { %2571 = vmatpush.bf16.msra.mxu3 %v3931_v28  ;;  %2632 = vmatpush.bf16.msrb.mxu0 %v3975_v47  ;;  %v4013_v47 = vld [vmem:[%s5494_s6 + $0x2a0] sm:$0xff] }
 0x60c   :  { %2607 = vmatpush.bf16.msrb.mxu2 %v3958_v30  ;;  %v4015_v30 = vld [vmem:[%s5494_s6 + $0x2b0] sm:$0xff] }
 0x60d   :  { %2598 = vmatpush.bf16.msrb.mxu1 %v3946_v32  ;;  %v4000_v32 = vld [vmem:[%s5494_s6 + $0x238] sm:$0xff] }
 0x60e   :  { %2572 = vmatpush.bf16.msra.mxu3 %v3930_v34  ;;  %2633 = vmatpush.bf16.msrb.mxu0 %v3974_v50  ;;  %v1109_v50 = vperm.slane %v5238_v11, 3 }
 0x610   :  { %2608 = vmatpush.bf16.msrb.mxu2 %v3957_v37  ;;  %v4008_v37 = vld [vmem:[%s5494_s6 + $0x278] sm:$0xff] }
 0x611   :  { %2599 = vmatpush.bf16.msrb.mxu1 %v3945_v38  ;;  %v4014_v38 = vld [vmem:[%s5494_s6 + $0x2a8] sm:$0xff] }
 0x612   :  { %2573 = vmatpush.bf16.msra.mxu3 %v3929_v41  ;;  %2634 = vmatpush.bf16.msrb.mxu0 %v3973_v54  ;;  %v4012_v54 = vld [vmem:[%s5494_s6 + $0x298] sm:$0xff] }
 0x613   :  { %3309 = vmatmul.msk.bf16.vlgmr.msra.gmra.mxu2 %vm641_vm0, %v4940_v31  ;;  %v3982_v31 = vld [vmem:[%s5494_s6 + $0x1a8] sm:$0xff] }
 0x614   :  { %2609 = vmatpush.bf16.msrb.mxu2 %v3956_v44  ;;  %v1111_v44 = vperm.slane %v5238_v11, 5 }
 0x615   :  { %2644 = vmatpush.bf16.msra.mxu1 %v3984_v39 }
 0x616   :  { %2618 = vmatpush.bf16.msrb.mxu3 %v3968_v33  ;;  %2635 = vmatpush.bf16.msrb.mxu0 %v3972_v59  ;;  %v3999_v33 = vld [vmem:[%s5494_s6 + $0x230] sm:$0xff] }
 0x618   :  { %2610 = vmatpush.bf16.msrb.mxu2 %v3955_v48 }
 0x619   :  { %2645 = vmatpush.bf16.msra.mxu1 %v3983_v45 }
 0x61a   :  { %2619 = vmatpush.bf16.msrb.mxu3 %v3967_v46  ;;  %2636 = vmatpush.bf16.msrb.mxu0 %v3971_v63 }
 0x61c   :  { %2611 = vmatpush.bf16.msrb.mxu2 %v3954_v51  ;;  %v1110_v51 = vperm.slane %v5238_v11, 4 }
 0x61d   :  { %2646 = vmatpush.bf16.msra.mxu1 %v3982_v31  ;;  %v3998_v31 = vld [vmem:[%s5494_s6 + $0x228] sm:$0xff] }
 0x61e   :  { %2620 = vmatpush.bf16.msrb.mxu3 %v3966_v49  ;;  %2637 = vmatpush.bf16.msrb.mxu0 %v3970_v3  ;;  %v4006_v49 = vld [vmem:[%s5494_s6 + $0x268] sm:$0xff]  ;;  %v4011_v3 = vld [vmem:[%s5494_s6 + $0x290] sm:$0xff] }
 0x620   :  { %2612 = vmatpush.bf16.msrb.mxu2 %v3953_v55 }
 0x621   :  { %2647 = vmatpush.bf16.msra.mxu1 %v3981_v52 }
 0x622   :  { %2621 = vmatpush.bf16.msrb.mxu3 %v3965_v53  ;;  %2638 = vmatpush.bf16.msrb.mxu0 %v3969_v6  ;;  %v3996_v6 = vld [vmem:[%s5494_s6 + $0x218] sm:$0xff] }
 0x624   :  { %2657 = vmatpush.bf16.msra.mxu2 %v3992_v60 }
 0x625   :  { %2648 = vmatpush.bf16.msra.mxu1 %v3980_v56 }
 0x626   :  { %2622 = vmatpush.bf16.msrb.mxu3 %v3964_v58  ;;  %v3997_v58 = vld [vmem:[%s5494_s6 + $0x220] sm:$0xff] }
 0x628   :  { %2658 = vmatpush.bf16.msra.mxu2 %v3991_v0 }
 0x629   :  { %2649 = vmatpush.bf16.msra.mxu1 %v3979_v57 }
 0x62a   :  { %2623 = vmatpush.bf16.msrb.mxu3 %v3963_v62 }
 0x62c   :  { %2659 = vmatpush.bf16.msra.mxu2 %v3990_v4 }
 0x62d   :  { %2650 = vmatpush.bf16.msra.mxu1 %v3978_v61  ;;  %v4005_v61 = vld [vmem:[%s5494_s6 + $0x260] sm:$0xff] }
 0x62e   :  { %2624 = vmatpush.bf16.msrb.mxu3 %v3962_v2 }
 0x630   :  { %2660 = vmatpush.bf16.msra.mxu2 %v3989_v7  ;;  %v4004_v7 = vld [vmem:[%s5494_s6 + $0x258] sm:$0xff] }
 0x631   :  { %2651 = vmatpush.bf16.msra.mxu1 %v3977_v1 }
 0x632   :  { %2625 = vmatpush.bf16.msrb.mxu3 %v3961_v5 }
 0x634   :  { %2661 = vmatpush.bf16.msra.mxu2 %v3988_v8 }
 0x638   :  { %2662 = vmatpush.bf16.msra.mxu2 %v3987_v9  ;;  %v4024_v9 = vld [vmem:[%s5494_s6 + $0x2f8] sm:$0xff] }
 0x63c   :  { %2663 = vmatpush.bf16.msra.mxu2 %v3986_v10  ;;  %v5306_v10 = vld [vmem:[%s5493_s5 + $0x8] sm:$0xff] }
 0x640   :  { %2664 = vmatpush.bf16.msra.mxu2 %v3985_v12  ;;  %v4010_v12 = vld [vmem:[%s5494_s6 + $0x288] sm:$0xff] }
 0x651   :  { %v1336_v13 = vpop.f32.mrf.mxu1  ;;  %v1375_v14 = vpop.f32.mrf.mxu0 }
 0x652   :  { %v1337_v15 = vadd.f32 %v1336_v13, %v1108_v36  ;;  %v1376_v52 = vadd.f32 %v1375_v14, %v1111_v44  ;;  %v1116_v14 = vperm.slane %v5306_v10, 2 }
 0x654   :  { %v1511_v20 = vmax.f32 %v1337_v15, 0.0  ;;  %v1514_v62 = vmax.f32 %v1376_v52, 0.0  ;;  %v3995_v15 = vld [vmem:[%s5494_s6 + $0x210] sm:$0xff]  ;;  %v4020_v52 = vld [vmem:[%s5494_s6 + $0x2d8] sm:$0xff] }
 0x656   :  { %v1527_v40 = vpack.c.bf16 %v1511_v20, %v1511_v20  ;;  %v1310_v23 = vpop.f32.mrf.mxu2  ;;  %v1323_v24 = vpop.f32.mrf.mxu3  ;;  %v1530_v8 = vpack.c.bf16 %v1514_v62, %v1514_v62  ;;  %v1115_v20 = vperm.slane %v5306_v10, 1  ;;  %v4038_v62 = vld [vmem:[%s5494_s6 + $0x368] sm:$0xff] }
 0x657   :  { %v1311_v25 = vadd.f32 %v1310_v23, %v1106_v16  ;;  %v1324_v26 = vadd.f32 %v1323_v24, %v1107_v17  ;;  %v4003_v16 = vld [vmem:[%s5494_s6 + $0x250] sm:$0xff]  ;;  %v4009_v23 = vld [vmem:[%s5494_s6 + $0x280] sm:$0xff] }
 0x658   :  { %2600 = vmatmul.bf16.vlgmr.msrb.gmra.mxu1 %v1527_v40  ;;  %v4023_v17 = vld [vmem:[%s5494_s6 + $0x2f0] sm:$0xff] }
 0x659   :  { %v1509_v18 = vmax.f32 %v1311_v25, 0.0  ;;  %v1510_v22 = vmax.f32 %v1324_v26, 0.0  ;;  %2696 = vmatpush.bf16.msrb.mxu1 %v4016_v21  ;;  %v1338_v28 = vpop.f32.mrf.mxu1  ;;  %v1377_v29 = vpop.f32.mrf.mxu0  ;;  %v4048_v25 = vld [vmem:[%s5494_s6 + $0x3b8] sm:$0xff]  ;;  %v3994_v26 = vld [vmem:[%s5494_s6 + $0x208] sm:$0xff] }
 0x65a   :  { %v1114_v28 = vperm.slane %v5306_v10, 0 }
 0x65b   :  { %v1525_v34 = vpack.c.bf16 %v1509_v18, %v1509_v18  ;;  %v1526_v35 = vpack.c.bf16 %v1510_v22, %v1510_v22  ;;  %v4002_v18 = vld [vmem:[%s5494_s6 + $0x248] sm:$0xff]  ;;  %v1113_v22 = vperm.slane %v5238_v11, 7 }
 0x65d   :  { %2697 = vmatpush.bf16.msrb.mxu1 %v4015_v30  ;;  %2574 = vmatmul.bf16.vlgmr.msra.gmra.mxu3 %v1525_v34  ;;  %v4022_v30 = vld [vmem:[%s5494_s6 + $0x2e8] sm:$0xff] }
 0x65e   :  { %2587 = vmatmul.bf16.vlgmr.msra.gmra.mxu0 %v1526_v35  ;;  %2670 = vmatpush.bf16.msra.mxu3 %v4000_v32  ;;  %v1312_v39 = vpop.f32.mrf.mxu2  ;;  %v1325_v41 = vpop.f32.mrf.mxu3 }
 0x65f   :  { %2683 = vmatpush.bf16.msra.mxu0 %v4008_v37  ;;  %v3993_v41 = vld [vmem:[%s5494_s6 + $0x200] sm:$0xff] }
 0x661   :  { %2698 = vmatpush.bf16.msrb.mxu1 %v4014_v38  ;;  %v1388_v45 = vpop.f32.mrf.mxu1  ;;  %v5269_v46 = vpop.f32.mrf.mxu0  ;;  %v4047_v38 = vld [vmem:[%s5494_s6 + $0x3b0] sm:$0xff] }
 0x662   :  { %v1389_v48 = vadd.f32 %v1388_v45, %v1112_v42  ;;  %2671 = vmatpush.bf16.msra.mxu3 %v3999_v33  ;;  %v1428_v32 = vadd.f32 %v5269_v46, %v1115_v20  ;;  %v4001_v42 = vld [vmem:[%s5494_s6 + $0x240] sm:$0xff] }
 0x663   :  { %2684 = vmatpush.bf16.msra.mxu0 %v4007_v43  ;;  %v4021_v33 = vld [vmem:[%s5494_s6 + $0x2e0] sm:$0xff]  ;;  %v4032_v43 = vld [vmem:[%s5494_s6 + $0x338] sm:$0xff] }
 0x664   :  { %v1515_v53 = vmax.f32 %v1389_v48, 0.0  ;;  %v1518_v44 = vmax.f32 %v1428_v32, 0.0 }
 0x665   :  { %2699 = vmatpush.bf16.msrb.mxu1 %v4013_v47 }
 0x666   :  { %v1531_v55 = vpack.c.bf16 %v1515_v53, %v1515_v53  ;;  %2672 = vmatpush.bf16.msra.mxu3 %v3998_v31  ;;  %v1349_v56 = vpop.f32.mrf.mxu2  ;;  %v1362_v57 = vpop.f32.mrf.mxu3  ;;  %v4040_v31 = vld [vmem:[%s5494_s6 + $0x378] sm:$0xff]  ;;  %v4031_v53 = vld [vmem:[%s5494_s6 + $0x330] sm:$0xff] }
 0x667   :  { %2685 = vmatpush.bf16.msra.mxu0 %v4006_v49  ;;  %v1350_v59 = vadd.f32 %v1349_v56, %v1109_v50  ;;  %v1363_v60 = vadd.f32 %v1362_v57, %v1110_v51  ;;  %v4046_v49 = vld [vmem:[%s5494_s6 + $0x3a8] sm:$0xff] }
 0x668   :  { %2652 = vmatmul.bf16.vlgmr.msra.gmra.mxu1 %v1531_v55  ;;  %v4039_v55 = vld [vmem:[%s5494_s6 + $0x370] sm:$0xff] }
 0x669   :  { %v1512_v63 = vmax.f32 %v1350_v59, 0.0  ;;  %v1513_v0 = vmax.f32 %v1363_v60, 0.0  ;;  %2700 = vmatpush.bf16.msrb.mxu1 %v4012_v54  ;;  %v1390_v1 = vpop.f32.mrf.mxu1  ;;  %v1429_v2 = vpop.f32.mrf.mxu0  ;;  %v1534_v54 = vpack.c.bf16 %v1518_v44, %v1518_v44  ;;  %v4019_v59 = vld [vmem:[%s5494_s6 + $0x2d0] sm:$0xff]  ;;  %v4030_v60 = vld [vmem:[%s5494_s6 + $0x328] sm:$0xff]  ;;  %v4052_v44 = vld [vmem:[%s5494_s6 + $0x3d8] sm:$0xff] }
 0x66a   :  { %2673 = vmatpush.bf16.msra.mxu3 %v3997_v58  ;;  %v4045_v58 = vld [vmem:[%s5494_s6 + $0x3a0] sm:$0xff]  ;;  %v4018_v1 = vld [vmem:[%s5494_s6 + $0x2c8] sm:$0xff] }
 0x66b   :  { %v1528_v4 = vpack.c.bf16 %v1512_v63, %v1512_v63  ;;  %v1529_v5 = vpack.c.bf16 %v1513_v0, %v1513_v0  ;;  %2686 = vmatpush.bf16.msra.mxu0 %v4005_v61  ;;  %v4044_v63 = vld [vmem:[%s5494_s6 + $0x398] sm:$0xff]  ;;  %v1117_v0 = vperm.slane %v5306_v10, 3  ;;  %v4029_v2 = vld [vmem:[%s5494_s6 + $0x320] sm:$0xff] }
 0x66d   :  { %2701 = vmatpush.bf16.msrb.mxu1 %v4011_v3  ;;  %2613 = vmatmul.bf16.vlgmr.msrb.gmra.mxu2 %v1528_v4  ;;  %v4037_v3 = vld [vmem:[%s5494_s6 + $0x360] sm:$0xff] }
 0x66e   :  { %2626 = vmatmul.bf16.vlgmr.msrb.gmra.mxu3 %v1529_v5  ;;  %2639 = vmatmul.bf16.vlgmr.msrb.gmra.mxu0 %v1530_v8  ;;  %v1351_v36 = vpop.f32.mrf.mxu2  ;;  %v1364_v13 = vpop.f32.mrf.mxu3  ;;  %v1120_v8 = vperm.slane %v5306_v10, 6 }
 0x66f   :  { %2674 = vmatpush.bf16.msra.mxu3 %v3996_v6  ;;  %2687 = vmatpush.bf16.msra.mxu0 %v4004_v7  ;;  %v4043_v6 = vld [vmem:[%s5494_s6 + $0x390] sm:$0xff] }
 0x670   :  { %2709 = vmatpush.bf16.msrb.mxu2 %v4024_v9  ;;  %v4017_v9 = vld [vmem:[%s5494_s6 + $0x2c0] sm:$0xff] }
 0x671   :  { %2702 = vmatpush.bf16.msrb.mxu1 %v4010_v12  ;;  %v1440_v21 = vpop.f32.mrf.mxu1  ;;  %v5322_v40 = vpop.f32.mrf.mxu0  ;;  %v4028_v12 = vld [vmem:[%s5494_s6 + $0x318] sm:$0xff] }
 0x672   :  { %v1441_v24 = vadd.f32 %v1440_v21, %v1116_v14  ;;  %v4036_v14 = vld [vmem:[%s5494_s6 + $0x358] sm:$0xff]  ;;  %v4027_v21 = vld [vmem:[%s5494_s6 + $0x310] sm:$0xff] }
 0x673   :  { %2675 = vmatpush.bf16.msra.mxu3 %v3995_v15  ;;  %2688 = vmatpush.bf16.msra.mxu0 %v4003_v16  ;;  %v4056_v15 = vld [vmem:[%s5494_s6 + $0x3f8] sm:$0xff]  ;;  %v4042_v16 = vld [vmem:[%s5494_s6 + $0x388] sm:$0xff] }
 0x674   :  { %v1519_v29 = vmax.f32 %v1441_v24, 0.0  ;;  %2710 = vmatpush.bf16.msrb.mxu2 %v4023_v17  ;;  %v4035_v24 = vld [vmem:[%s5494_s6 + $0x350] sm:$0xff] }
 0x675   :  { %2703 = vmatpush.bf16.msrb.mxu1 %v4009_v23  ;;  %v1118_v23 = vperm.slane %v5306_v10, 4 }
 0x676   :  { %v1535_v34 = vpack.c.bf16 %v1519_v29, %v1519_v29  ;;  %v1401_v35 = vpop.f32.mrf.mxu2  ;;  %v1414_v37 = vpop.f32.mrf.mxu3 }
 0x677   :  { %2676 = vmatpush.bf16.msra.mxu3 %v3994_v26  ;;  %2689 = vmatpush.bf16.msra.mxu0 %v4002_v18  ;;  %v1402_v11 = vadd.f32 %v1401_v35, %v1113_v22  ;;  %v1415_v39 = vadd.f32 %v1414_v37, %v1114_v28  ;;  %v1119_v26 = vperm.slane %v5306_v10, 5  ;;  %v4041_v28 = vld [vmem:[%s5494_s6 + $0x380] sm:$0xff]  ;;  %v4054_v35 = vld [vmem:[%s5494_s6 + $0x3e8] sm:$0xff] }
 0x678   :  { %2711 = vmatpush.bf16.msrb.mxu2 %v4022_v30  ;;  %2704 = vmatmul.bf16.vlgmr.msrb.gmra.mxu1 %v1535_v34  ;;  %v4026_v30 = vld [vmem:[%s5494_s6 + $0x308] sm:$0xff] }
 0x679   :  { %2748 = vmatpush.bf16.msra.mxu1 %v4048_v25  ;;  %v1516_v45 = vmax.f32 %v1402_v11, 0.0  ;;  %v1517_v46 = vmax.f32 %v1415_v39, 0.0  ;;  %v1442_v47 = vpop.f32.mrf.mxu1  ;;  %v1481_v48 = vpop.f32.mrf.mxu0  ;;  %v4055_v25 = vld [vmem:[%s5494_s6 + $0x3f0] sm:$0xff]  ;;  %v4034_v34 = vld [vmem:[%s5494_s6 + $0x348] sm:$0xff]  ;;  %v1480_v37 = vadd.f32 %v5322_v40, %v1119_v26  ;;  %v4025_v11 = vld [vmem:[%s5494_s6 + $0x300] sm:$0xff] }
 0x67a   :  { %v1121_v47 = vperm.slane %v5306_v10, 7 }
 0x67b   :  { %v1532_v50 = vpack.c.bf16 %v1516_v45, %v1516_v45  ;;  %v1533_v51 = vpack.c.bf16 %v1517_v46, %v1517_v46  ;;  %2677 = vmatpush.bf16.msra.mxu3 %v3993_v41  ;;  %2690 = vmatpush.bf16.msra.mxu0 %v4001_v42  ;;  %v4033_v41 = vld [vmem:[%s5494_s6 + $0x340] sm:$0xff]  ;;  %v4051_v46 = vld [vmem:[%s5494_s6 + $0x3d0] sm:$0xff] }
 0x67c   :  { %2712 = vmatpush.bf16.msrb.mxu2 %v4021_v33  ;;  %v4053_v42 = vld [vmem:[%s5494_s6 + $0x3e0] sm:$0xff]  ;;  %v1522_v33 = vmax.f32 %v1480_v37, 0.0 }
 0x67d   :  { %2749 = vmatpush.bf16.msra.mxu1 %v4047_v38  ;;  %2665 = vmatmul.bf16.vlgmr.msra.gmra.mxu2 %v1532_v50  ;;  %v4049_v50 = vld [vmem:[%s5494_s6 + $0x3c0] sm:$0xff] }
 0x67e   :  { %2678 = vmatmul.bf16.vlgmr.msra.gmra.mxu3 %v1533_v51  ;;  %v1403_v56 = vpop.f32.mrf.mxu2  ;;  %v1416_v57 = vpop.f32.mrf.mxu3  ;;  %2691 = vmatmul.bf16.vlgmr.msra.gmra.mxu0 %v1534_v54  ;;  %v1538_v45 = vpack.c.bf16 %v1522_v33, %v1522_v33 }
 0x67f   :  { %2722 = vmatpush.bf16.msrb.mxu3 %v4032_v43  ;;  %2735 = vmatpush.bf16.msrb.mxu0 %v4040_v31  ;;  %v4050_v31 = vld [vmem:[%s5494_s6 + $0x3c8] sm:$0xff] }
 0x680   :  { %2713 = vmatpush.bf16.msrb.mxu2 %v4020_v52 }
 0x681   :  { %2750 = vmatpush.bf16.msra.mxu1 %v4046_v49  ;;  %v1492_v61 = vpop.f32.mrf.mxu1 }
 0x682   :  { %v1493_v20 = vadd.f32 %v1492_v61, %v1120_v8 }
 0x683   :  { %2723 = vmatpush.bf16.msrb.mxu3 %v4031_v53  ;;  %2736 = vmatpush.bf16.msrb.mxu0 %v4039_v55 }
 0x684   :  { %2714 = vmatpush.bf16.msrb.mxu2 %v4019_v59  ;;  %v1523_v29 = vmax.f32 %v1493_v20, 0.0 }
 0x685   :  { %2751 = vmatpush.bf16.msra.mxu1 %v4045_v58 }
 0x686   :  { %v1453_v4 = vpop.f32.mrf.mxu2  ;;  %v1466_v5 = vpop.f32.mrf.mxu3  ;;  %v1539_v38 = vpack.c.bf16 %v1523_v29, %v1523_v29 }
 0x687   :  { %2724 = vmatpush.bf16.msrb.mxu3 %v4030_v60  ;;  %2737 = vmatpush.bf16.msrb.mxu0 %v4038_v62  ;;  %v1454_v7 = vadd.f32 %v1453_v4, %v1117_v0  ;;  %v1467_v32 = vadd.f32 %v1466_v5, %v1118_v23 }
 0x688   :  { %2715 = vmatpush.bf16.msrb.mxu2 %v4018_v1 }
 0x689   :  { %2752 = vmatpush.bf16.msra.mxu1 %v4044_v63  ;;  %v1520_v36 = vmax.f32 %v1454_v7, 0.0  ;;  %v1494_v13 = vpop.f32.mrf.mxu1  ;;  %v1521_v39 = vmax.f32 %v1467_v32, 0.0 }
 0x68b   :  { %2725 = vmatpush.bf16.msrb.mxu3 %v4029_v2  ;;  %2738 = vmatpush.bf16.msrb.mxu0 %v4037_v3  ;;  %v1536_v17 = vpack.c.bf16 %v1520_v36, %v1520_v36  ;;  %v1537_v43 = vpack.c.bf16 %v1521_v39, %v1521_v39  ;;  %v4100_v3 = vld [vmem:[%s5497_s9 + $0x3] ss:$0 sm:$0xff] }
 0x68c   :  { %2716 = vmatpush.bf16.msrb.mxu2 %v4017_v9 }
 0x68d   :  { %2753 = vmatpush.bf16.msra.mxu1 %v4043_v6 }
 0x68e   :  { %v1455_v18 = vpop.f32.mrf.mxu2  ;;  %v1468_v22 = vpop.f32.mrf.mxu3 }
 0x68f   :  { %2726 = vmatpush.bf16.msrb.mxu3 %v4028_v12  ;;  %2739 = vmatpush.bf16.msrb.mxu0 %v4036_v14 }
 0x690   :  { %2761 = vmatpush.bf16.msra.mxu2 %v4056_v15 }
 0x691   :  { %2754 = vmatpush.bf16.msra.mxu1 %v4042_v16  ;;  %2717 = vmatmul.bf16.vlgmr.msrb.gmra.mxu2 %v1536_v17 }
 0x693   :  { %2727 = vmatpush.bf16.msrb.mxu3 %v4027_v21  ;;  %2740 = vmatpush.bf16.msrb.mxu0 %v4035_v24 }
 0x694   :  { %2762 = vmatpush.bf16.msra.mxu2 %v4055_v25 }
 0x695   :  { %2755 = vmatpush.bf16.msra.mxu1 %v4041_v28 }
 0x696   :  { %v1505_v40 = vpop.f32.mrf.mxu2 }
 0x697   :  { %2728 = vmatpush.bf16.msrb.mxu3 %v4026_v30  ;;  %2741 = vmatpush.bf16.msrb.mxu0 %v4034_v34  ;;  %v1506_v49 = vadd.f32 %v1505_v40, %v1121_v47 }
 0x698   :  { %2763 = vmatpush.bf16.msra.mxu2 %v4054_v35  ;;  %2756 = vmatmul.bf16.vlgmr.msra.gmra.mxu1 %v1539_v38 }
 0x699   :  { %v1524_v51 = vmax.f32 %v1506_v49, 0.0 }
 0x69b   :  { %2729 = vmatpush.bf16.msrb.mxu3 %v4025_v11  ;;  %2742 = vmatpush.bf16.msrb.mxu0 %v4033_v41  ;;  %v1540_v52 = vpack.c.bf16 %v1524_v51, %v1524_v51 }
 0x69c   :  { %2764 = vmatpush.bf16.msra.mxu2 %v4053_v42 }
 0x69e   :  { %2730 = vmatmul.bf16.vlgmr.msrb.gmra.mxu3 %v1537_v43  ;;  %2743 = vmatmul.bf16.vlgmr.msrb.gmra.mxu0 %v1538_v45  ;;  %v1507_v48 = vpop.f32.mrf.mxu2 }
 0x6a0   :  { %2765 = vmatpush.bf16.msra.mxu2 %v4052_v44 }
 0x6a4   :  { %2766 = vmatpush.bf16.msra.mxu2 %v4051_v46 }
 0x6a8   :  { %2767 = vmatpush.bf16.msra.mxu2 %v4050_v31 }
 0x6ac   :  { %2768 = vmatpush.bf16.msra.mxu2 %v4049_v50 }
 0x6af   :  { %2769 = vmatmul.bf16.vlgmr.msra.gmra.mxu2 %v1540_v52 }
 0x6d5   :  { %v2601_v53 = vpop.f32.mrf.mxu1 }
 0x6db   :  { %v2588_v54 = vpop.f32.mrf.mxu0 }
 0x6dd   :  { %v2603_v55 = vpop.f32.mrf.mxu1 }
 0x6e0   :  { %v2575_v10 = vpop.f32.mrf.mxu3 }
 0x6e1   :  { %v2576_v6 = vadd.f32 %v4100_v3, %v2575_v10  ;;  %v4101_v10 = vld [vmem:[%s5497_s9 + $0x4] ss:$0 sm:$0xff] }
 0x6e3   :  { %v2590_v56 = vpop.f32.mrf.mxu0  ;;  %v2589_v9 = vadd.f32 %v2588_v54, %v2576_v6 }
 0x6e5   :  { %v2653_v57 = vpop.f32.mrf.mxu1  ;;  %v2602_v36 = vadd.f32 %v2601_v53, %v2589_v9 }
 0x6e8   :  { %v2577_v58 = vpop.f32.mrf.mxu3 }
 0x6eb   :  { %v2640_v59 = vpop.f32.mrf.mxu0 }
 0x6ed   :  { %v2655_v60 = vpop.f32.mrf.mxu1 }
 0x6f0   :  { %v2614_v61 = vpop.f32.mrf.mxu2 }
 0x6f1   :  { %v2627_v62 = vpop.f32.mrf.mxu3  ;;  %v2615_v13 = vadd.f32 %v2614_v61, %v2602_v36 }
 0x6f3   :  { %v2642_v63 = vpop.f32.mrf.mxu0  ;;  %v2628_v16 = vadd.f32 %v2627_v62, %v2615_v13  ;;  %v2831_v13 = vlaneseq }
 0x6f5   :  { %v2705_v0 = vpop.f32.mrf.mxu1  ;;  %v2641_v17 = vadd.f32 %v2640_v59, %v2628_v16 }
 0x6f7   :  { %v2654_v23 = vadd.f32 %v2653_v57, %v2641_v17  ;;  %v4102_v57 = vld [vmem:[%s5497_s9 + $0x5] ss:$0 sm:$0xff] }
 0x6f8   :  { %v2616_v1 = vpop.f32.mrf.mxu2 }
 0x6f9   :  { %v2629_v2 = vpop.f32.mrf.mxu3 }
 0x6fb   :  { %v2692_v4 = vpop.f32.mrf.mxu0 }
 0x6fd   :  { %v2707_v5 = vpop.f32.mrf.mxu1 }
 0x700   :  { %v2666_v7 = vpop.f32.mrf.mxu2 }
 0x701   :  { %v2679_v8 = vpop.f32.mrf.mxu3  ;;  %v2667_v24 = vadd.f32 %v2666_v7, %v2654_v23 }
 0x703   :  { %v2694_v12 = vpop.f32.mrf.mxu0  ;;  %v2680_v26 = vadd.f32 %v2679_v8, %v2667_v24 }
 0x705   :  { %v2693_v28 = vadd.f32 %v2692_v4, %v2680_v26 }
 0x707   :  { %v2706_v32 = vadd.f32 %v2705_v0, %v2693_v28  ;;  %v2804_v0 = vld [vmem:[%s5495_s7] sm:$0xf]  ;;  %s4165_s7 = smov [#allocation2]  }
 0x708   :  { %v2668_v14 = vpop.f32.mrf.mxu2  ;;  %s2858_s9 = sshll.u32 %s4165_s7, 4  ;;  %s2859_s9 = int_to_ptr.vmem [resolvable:$true] %s2858_s9 }
 0x709   :  { %v2681_v15 = vpop.f32.mrf.mxu3 }
 0x714   :  { %v2718_v20 = vpop.f32.mrf.mxu2 }
 0x715   :  { %v2757_v21 = vpop.f32.mrf.mxu1  ;;  %v2719_v34 = vadd.f32 %v2718_v20, %v2706_v32  ;;  %v2832_v20 = vshrl.u32 %v2831_v13, 7 }
 0x717   :  { %vm2848_vm15 = vcmp.lt.s32.totalorder %v2832_v20, 4 }
 0x71b   :  { %v2744_v25 = vpop.f32.mrf.mxu0 }
 0x71c   :  { %v2720_v18 = vpop.f32.mrf.mxu2 }
 0x71d   :  { %v2759_v22 = vpop.f32.mrf.mxu1 }
 0x721   :  { %v2731_v29 = vpop.f32.mrf.mxu3 }
 0x722   :  { %v2732_v35 = vadd.f32 %v2731_v29, %v2719_v34 }
 0x723   :  { %v2746_v30 = vpop.f32.mrf.mxu0 }
 0x724   :  { %v2745_v38 = vadd.f32 %v2744_v25, %v2732_v35 }
 0x726   :  { %v2758_v11 = vadd.f32 %v2757_v21, %v2745_v38 }
 0x729   :  { %v2733_v37 = vpop.f32.mrf.mxu3 }
 0x732   :  { %v2770_v39 = vpop.f32.mrf.mxu2 }
 0x733   :  { %v2771_v41 = vadd.f32 %v2770_v39, %v2758_v11 }
 0x735   :  { %v2774_v42 = vadd.f32 %v2771_v41, %v4927_v27  ;;  %v2806_v27 = vld [vmem:[%s5496_s8] sm:$0xff] }
 0x736   :  { %2809 = vperm.xlu1 %4094, %v2806_v27  }
 0x737   :  { %v2775_v33 = vsel %vm641_vm0, %v2774_v42, 0.0 }
 0x738   :  { %2776 = vadd.xlane.f32.xlu2 %v2775_v33 }
 0x73a   :  { %v2772_v40 = vpop.f32.mrf.mxu2 }
 0x7a8   :  { %v2810_v1 = vpop.permute.xlu1 %2809 }
 0x7ab   :  { %v2777_v43 = vpop.xlane.xlu2 %2776 }
 0x7ac   :  { %v2778_v44 = vmul.f32 %v2777_v43, %v4800_v19 }
 0x7ae   :  { %v2779_v45 = vsub.f32 %v2774_v42, %v2778_v44 }
 0x7b0   :  { %v2780_v46 = vmul.f32 %v2779_v45, %v2779_v45 }
 0x7b2   :  { %v2781_v47 = vsel %vm641_vm0, %v2780_v46, 0.0 }
 0x7b3   :  { %2782 = vadd.xlane.f32.xlu0 %v2781_v47 }
 0x826   :  { %v2783_v48 = vpop.xlane.xlu0 %2782 }
 0x827   :  { %v2784_v31 = vmul.f32 %v2783_v48, %v4800_v19 }
 0x829   :  { %v2785_v49 = vadd.f32 1e-05, %v2784_v31 }
 0x82b   :  { %4111 = vrsqrt.f32 %v2785_v49  ;;  %vm2792_vm12 = vweird.f32 %v2785_v49 }
 0x831   :  { %v4112_v50 = vpop.eup %4111 }
 0x832   :  { %v2787_v51 = vmul.f32 %v4112_v50, %v2785_v49  ;;  %vm2793_vm11 = vweird.f32 %v4112_v50 }
 0x833   :  { %vm2794_vm13 = vmor %vm2792_vm12, %vm2793_vm11 }
 0x834   :  { %v2788_v52 = vmul.f32 %v4112_v50, %v2787_v51 }
 0x836   :  { %v2789_v53 = vmul.f32 0.5, %v2788_v52 }
 0x838   :  { %v2790_v54 = vsub.f32 1.5, %v2789_v53 }
 0x83a   :  { %v2791_v55 = vmul.f32 %v4112_v50, %v2790_v54 }
 0x83c   :  { %v2795_v19 = vsel %vm2794_vm13, %v4112_v50, %v2791_v55 }
 0x83d   :  { %v2796_v56 = vmul.f32 %v2795_v19, %v2779_v45 }
 0x83f   :  { %v2798_v58 = vmul.f32 %v4101_v10, %v2796_v56 }
 0x841   :  { %v2800_v59 = vadd.f32 %v4102_v57, %v2798_v58 }
 0x843   :  { %vm2801_vm14 = vcmp.ge.f32.partialorder %v2800_v59, 0.0  ;;  %v2802_v60 = vmul.f32 0.01, %v2800_v59 }
 0x845   :  { %v2803_v61 = vsel %vm2801_vm14, %v2800_v59, %v2802_v60 }
 0x846   :  { %v2805_v62 = vpack.c.bf16 %v2803_v61, %v2803_v61 }
 0x848   :  { %v2816_v63 = vsel %vm641_vm0, %v2805_v62, 0 }
 0x849   :  { %2825 = vmatpush.bf16.xpose.msra.mxu3 %v2816_v63 }
 0x850   :  { %3822 = vmatmul.msk.bf16.vlgmr.msra.gmra.mxu3 %vm641_vm0, %v2804_v0 }
 0x8d3   :  { %v2827_v2 = vpop.f32.mrf.mxu3 }
 0x8d4   :  { %v2828_v3 = vadd.f32 %v2827_v2, %v2810_v1 }
 0x8d6   :  { %v2834_v4 = vand.u32 2147483647, %v2828_v3  ;;  %v2833_v21 = vmax.f32 %v2828_v3, 0.0 }
 0x8d8   :  { %v2835_v5 = vsub.f32 0.0, %v2834_v4 }
 0x8da   :  { %v2836_v6 = vmul.f32 1.442695, %v2835_v5 }
 0x8db   :  { %v2829_v7 = vpop.f32.mrf.mxu3 }
 0x8dc   :  { %4113 = vpow2.f32 %v2836_v6 }
 0x8e2   :  { %v4114_v8 = vpop.eup %4113 }
 0x8e3   :  { %v2838_v9 = vadd.f32 1.0, %v4114_v8  ;;  %v2841_v12 = vmul.f32 -0.5, %v4114_v8  ;;  %v2844_v14 = vand.u32 2147483647, %v4114_v8 }
 0x8e5   :  { %4115 = vlog2.f32 %v2838_v9  ;;  %v2842_v36 = vadd.f32 1.0, %v2841_v12  ;;  %vm2845_vm0 = vcmp.lt.f32.partialorder %v2844_v14, 0.0004427343 }
 0x8e6   :  { %4117 = vtanh.f32 %v2828_v3 }
 0x8e7   :  { %v2843_v17 = vmul.f32 %v4114_v8, %v2842_v36 }
 0x8eb   :  { %v4116_v15 = vpop.eup %4115 }
 0x8ec   :  { %v2840_v16 = vmul.f32 0.6931472, %v4116_v15  ;;  %v4118_v26 = vpop.eup %4117 }
 0x8ee   :  { %v2846_v23 = vsel %vm2845_vm0, %v2843_v17, %v2840_v16 }
 0x8ef   :  { %v2847_v24 = vadd.f32 %v2846_v23, %v2833_v21 }
 0x8f1   :  { %v2850_v25 = vmax.f32 %v2847_v24, 0.0001 }
 0x8f3   :  { %v2851_v18 = vsel %vm2848_vm15, %v4118_v26, %v2850_v25 }
 0x8f4   :  { %2852 = vst.msk [vmem:[#allocation2] sm:$0xff] %vm815_vm8, %v2851_v18 }
 0x8f5   :  { %2863 = dma.vmem_to_hbm [thread:$0]  %s2859_s9, 128, %s2861_s14, [#allocation3]  }
 0x8f6   :  { %4143 = dma.done.wait [#allocation3], 128  }
 0x8f7   :  { %4144 = vsyncadd [#allocation3], 4294967168 }
 0x8f8   :  { %2868 = vsyncpa [#allocation3], 1 }

</bundles_post_ra>
